<compile_context>
chip_gen: v6e
topology: v6e:2x2x1
jax: 0.10.0
libtpu: 0.0.40
codegen_flags: <defaults>
</compile_context>

<pallas_src>
import numpy as np
import jax
import jax.numpy as jnp
from jax import lax
from jax.experimental import pallas as pl
from jax.experimental.pallas import tpu as pltpu


def _ceil_to(x, m):
    return -(-x // m) * m


# ----------------------------------------------------------------------------
# Pallas kernel: gridded dense path + tiny sparse (obj-cell) path.
# ----------------------------------------------------------------------------
def _make_kernel(num_classes, t_max, tmr, ignore_threshold):
    C = num_classes
    EPS = 1e-9

    def bce_logits(z, t):
        # BCE(sigmoid(z), t) in logits form: max(z,0) - z*t + log(1 + exp(-|z|))
        return jnp.maximum(z, 0.0) - z * t + jnp.log(1.0 + jnp.exp(-jnp.abs(z)))

    def kernel(gt_ref, pred_ref, obj_ref, noobj_ref, grid_ref,
               sp_pred_ref, sp_tgt_ref, sp_aux_ref, out_ref):
        b = pl.program_id(0)      # batch  ("parallel"  -> megacore on v7x)
        mt = pl.program_id(1)     # M-tile ("arbitrary" -> reduction axis)

        # per-batch partial-sum accumulator, resident across the mt axis
        @pl.when(mt == 0)
        def _init():
            out_ref[...] = jnp.zeros_like(out_ref)

        # ---------------- dense path: decode, ignore mask, conf BCE ----------
        obj = obj_ref[...].astype(jnp.float32)        # (tmr,128) 0/1
        noobj = noobj_ref[...].astype(jnp.float32)    # (tmr,128) 0/1

        gx = grid_ref[0]
        gy = grid_ref[1]
        aw = grid_ref[2]
        ah = grid_ref[3]

        px = jax.nn.sigmoid(pred_ref[0]) + gx
        py = jax.nn.sigmoid(pred_ref[1]) + gy
        pw = jnp.exp(pred_ref[2]) * aw
        ph = jnp.exp(pred_ref[3]) * ah
        p_x1 = px - 0.5 * pw
        p_x2 = px + 0.5 * pw
        p_y1 = py - 0.5 * ph
        p_y2 = py + 0.5 * ph
        p_area = pw * ph

        # max IoU of each predicted box vs this image's GT boxes (SMEM scalars).
        # Padded GT rows are all-zero corners -> intersection is exactly 0 and
        # the +EPS denominator keeps iou finite (0), so they never ignore cells.
        def gt_body(t, iou_max):
            base = (b * t_max + t) * 4
            gx1 = gt_ref[base + 0]
            gy1 = gt_ref[base + 1]
            gx2 = gt_ref[base + 2]
            gy2 = gt_ref[base + 3]
            g_area = (gx2 - gx1) * (gy2 - gy1)
            iw = jnp.maximum(jnp.minimum(gx2, p_x2) - jnp.maximum(gx1, p_x1), 0.0)
            ih = jnp.maximum(jnp.minimum(gy2, p_y2) - jnp.maximum(gy1, p_y1), 0.0)
            inter = iw * ih
            iou = inter / (g_area + p_area - inter + EPS)
            return jnp.maximum(iou_max, iou)

        iou_max = lax.fori_loop(0, t_max, gt_body,
                                jnp.zeros((tmr, 128), jnp.float32), unroll=True)
        noobj = jnp.where(iou_max > ignore_threshold, 0.0, noobj)

        conf_mask = jnp.maximum(noobj, obj)            # noobj | obj  (0/1)
        conf_sum = jnp.sum(conf_mask * bce_logits(pred_ref[4], obj))
        conf_cnt = jnp.sum(conf_mask)
        n_obj = jnp.sum(obj)

        lane = lax.broadcasted_iota(jnp.int32, out_ref.shape, 1)
        out_ref[...] += (jnp.where(lane == 0, conf_sum, 0.0)
                         + jnp.where(lane == 1, conf_cnt, 0.0)
                         + jnp.where(lane == 2, n_obj, 0.0))

        # --------- sparse path: GIoU loc + class BCE only at assigned cells --
        @pl.when(jnp.logical_and(b == 0, mt == 0))
        def _sparse():
            sp = sp_pred_ref[...]                      # (SPR,128) raw logits
            st = sp_tgt_ref[...]                       # (SPR,128) y_true row
            sa = sp_aux_ref[...]                       # gx,gy,aw,ah,valid
            valid = sa[:, 4:5]

            spx = jax.nn.sigmoid(sp[:, 0:1]) + sa[:, 0:1]
            spy = jax.nn.sigmoid(sp[:, 1:2]) + sa[:, 1:2]
            spw = jnp.exp(sp[:, 2:3]) * sa[:, 2:3]
            sph = jnp.exp(sp[:, 3:4]) * sa[:, 3:4]
            tx, ty = st[:, 0:1], st[:, 1:2]
            tw, th = st[:, 2:3], st[:, 3:4]

            px1, px2 = spx - 0.5 * spw, spx + 0.5 * spw
            py1, py2 = spy - 0.5 * sph, spy + 0.5 * sph
            tx1, tx2 = tx - 0.5 * tw, tx + 0.5 * tw
            ty1, ty2 = ty - 0.5 * th, ty + 0.5 * th
            iw = jnp.maximum(jnp.minimum(px2, tx2) - jnp.maximum(px1, tx1), 0.0)
            ih = jnp.maximum(jnp.minimum(py2, ty2) - jnp.maximum(py1, ty1), 0.0)
            inter = iw * ih
            union = spw * sph + tw * th - inter
            iou = inter / (union + EPS)
            ew = jnp.maximum(jnp.maximum(px2, tx2) - jnp.minimum(px1, tx1), 0.0)
            eh = jnp.maximum(jnp.maximum(py2, ty2) - jnp.minimum(py1, ty1), 0.0)
            enclose = ew * eh
            giou = iou - (enclose - union) / (enclose + EPS)
            loc_sum = jnp.sum(valid * (1.0 - giou))

            sp_lane = lax.broadcasted_iota(jnp.int32, sp.shape, 1)
            cls_mask = jnp.logical_and(sp_lane >= 5, sp_lane < 5 + C)
            cls_mask = cls_mask.astype(jnp.float32) * valid
            cls_sum = jnp.sum(cls_mask * bce_logits(sp, st))

            out_ref[...] += (jnp.where(lane == 3, loc_sum, 0.0)
                             + jnp.where(lane == 4, cls_sum, 0.0))

    return kernel


def _dense_loss_call(gt_flat, pred5, obj, noobj, grid_planes,
                     sp_pred, sp_tgt, sp_aux, *,
                     num_classes, t_max, tmr, ignore_threshold):
    bs = pred5.shape[0]
    rows = pred5.shape[2]
    n_mt = rows // tmr
    spr = sp_pred.shape[0]
    kernel = _make_kernel(num_classes, t_max, tmr, ignore_threshold)

    return pl.pallas_call(
        kernel,
        grid=(bs, n_mt),
        in_specs=[
            pl.BlockSpec(memory_space=pltpu.MemorySpace.SMEM),             # gt scalars
            pl.BlockSpec((None, 5, tmr, 128), lambda b, m: (b, 0, m, 0)),  # pred planes
            pl.BlockSpec((None, tmr, 128), lambda b, m: (b, m, 0)),        # obj (bf16)
            pl.BlockSpec((None, tmr, 128), lambda b, m: (b, m, 0)),        # noobj (bf16)
            pl.BlockSpec((4, tmr, 128), lambda b, m: (0, m, 0)),           # grid planes
            pl.BlockSpec((spr, 128), lambda b, m: (0, 0)),                 # sparse pred
            pl.BlockSpec((spr, 128), lambda b, m: (0, 0)),                 # sparse target
            pl.BlockSpec((spr, 128), lambda b, m: (0, 0)),                 # sparse aux
        ],
        out_specs=pl.BlockSpec((None, 8, 128), lambda b, m: (b, 0, 0)),
        out_shape=jax.ShapeDtypeStruct((bs, 8, 128), jnp.float32),
        compiler_params=pltpu.CompilerParams(
            dimension_semantics=("parallel", "arbitrary"),
            vmem_limit_bytes=48 * 1024 * 1024),
    )(gt_flat, pred5, obj, noobj, grid_planes, sp_pred, sp_tgt, sp_aux)


# ----------------------------------------------------------------------------
# Host-side glue reproducing get_target() (data-dependent scatter, tiny work).
# ----------------------------------------------------------------------------
def get_target_np(l, targets, scaled_anchors, in_h, in_w, anchors_mask, bbox_attrs):
    bs = len(targets)
    na = len(anchors_mask[l])
    noobj = np.ones((bs, na, in_h, in_w), np.float32)
    y_true = np.zeros((bs, na, in_h, in_w, bbox_attrs), np.float32)
    for b in range(bs):
        if len(targets[b]) == 0:
            continue
        bt = np.asarray(targets[b], np.float32).copy()
        bt[:, [0, 2]] *= in_w
        bt[:, [1, 3]] *= in_h
        gw, gh = bt[:, 2:3], bt[:, 3:4]                       # (T,1)
        aw, ah = scaled_anchors[:, 0][None, :], scaled_anchors[:, 1][None, :]
        inter = np.minimum(gw, aw) * np.minimum(gh, ah)       # centered-box IoU
        union = gw * gh + aw * ah - inter
        best_ns = np.argmax(inter / union, axis=-1)
        for t, best_n in enumerate(best_ns):
            k = anchors_mask[l].index(int(best_n))            # mirrors torch .index()
            i = int(np.floor(bt[t, 0]))
            j = int(np.floor(bt[t, 1]))
            c = int(bt[t, 4])
            noobj[b, k, j, i] = 0.0
            y_true[b, k, j, i, 0:4] = bt[t, 0:4]
            y_true[b, k, j, i, 4] = 1.0
            y_true[b, k, j, i, 5 + c] = 1.0
    return y_true, noobj


# ----------------------------------------------------------------------------
# Forward: host glue + Pallas kernel + scalar epilogue.
# ----------------------------------------------------------------------------
def yolo_loss_forward(l, x_in, targets, *, anchors, anchors_mask, num_classes,
                      input_shape, balance, box_ratio, obj_ratio, cls_ratio,
                      ignore_threshold, max_tile_rows=512):
    bs = int(x_in.shape[0])
    in_h = int(x_in.shape[2])
    in_w = int(x_in.shape[3])
    na = len(anchors_mask[l])
    A = 5 + num_classes
    assert A <= 128, "class count too large for single-lane-row layout"
    M = na * in_h * in_w

    stride_h = input_shape[0] / in_h
    stride_w = input_shape[1] / in_w
    scaled_anchors = np.array([(aw / stride_w, ah / stride_h) for aw, ah in anchors],
                              dtype=np.float32)

    # host-side target assignment (numpy, tiny)
    y_true, noobj = get_target_np(l, targets, scaled_anchors, in_h, in_w,
                                  anchors_mask, A)

    # lane-dense dense-path layout: flatten (na,H,W) -> M, pad, reshape (rows,128)
    rows_needed = _ceil_to(M, 128) // 128
    tmr = min(max_tile_rows, _ceil_to(rows_needed, 16))   # sublane mult of 16 (bf16)
    rows = _ceil_to(rows_needed, tmr)
    m_pad = rows * 128

    def pad_plane(p2d):
        out = np.zeros((p2d.shape[0], m_pad), np.float32)
        out[:, :M] = p2d
        return out.reshape(p2d.shape[0], rows, 128)

    obj_np = (y_true[..., 4] == 1.0).astype(np.float32).reshape(bs, M)
    noobj_np = noobj.reshape(bs, M)
    obj_k = jnp.asarray(pad_plane(obj_np), dtype=jnp.bfloat16)      # 0/1 exact
    noobj_k = jnp.asarray(pad_plane(noobj_np), dtype=jnp.bfloat16)  # 0/1 exact

    # grid/anchor planes WITHOUT batch broadcast
    gx = np.broadcast_to(np.arange(in_w, dtype=np.float32)[None, None, :],
                         (na, in_h, in_w))
    gy = np.broadcast_to(np.arange(in_h, dtype=np.float32)[None, :, None],
                         (na, in_h, in_w))
    aw_l = scaled_anchors[anchors_mask[l], 0]
    ah_l = scaled_anchors[anchors_mask[l], 1]
    awm = np.broadcast_to(aw_l[:, None, None], (na, in_h, in_w))
    ahm = np.broadcast_to(ah_l[:, None, None], (na, in_h, in_w))
    grid_np = np.zeros((4, m_pad), np.float32)
    grid_np[:, :M] = np.stack([gx, gy, awm, ahm], axis=0).reshape(4, M)
    grid_k = jnp.asarray(grid_np.reshape(4, rows, 128))

    # pred: only the first 5 attribute planes are needed densely
    pred_v = x_in.reshape(bs, na, A, in_h, in_w)
    pred5 = jnp.transpose(pred_v[:, :, :5], (0, 2, 1, 3, 4)).reshape(bs, 5, M)
    pred5 = jnp.pad(pred5, ((0, 0), (0, 0), (0, m_pad - M)))
    pred5 = pred5.reshape(bs, 5, rows, 128)

    # GT corner boxes (grid units) -> flat SMEM scalars (padded rows = zeros)
    t_max = max(1, max((len(t) for t in targets), default=1))
    gt_flat = np.zeros((bs * t_max * 4,), np.float32)
    for b in range(bs):
        bt = np.asarray(targets[b], np.float32)
        if bt.size == 0:
            continue
        bt = bt.copy()
        bt[:, [0, 2]] *= in_w
        bt[:, [1, 3]] *= in_h
        for t in range(bt.shape[0]):
            cx, cy, bw, bh = bt[t, :4]
            base = (b * t_max + t) * 4
            gt_flat[base + 0] = cx - bw / 2
            gt_flat[base + 1] = cy - bh / 2
            gt_flat[base + 2] = cx + bw / 2
            gt_flat[base + 3] = cy + bh / 2
    gt_k = jnp.asarray(gt_flat)

    # sparse (obj) cells: gather <= bs*T assigned cells
    idx = np.argwhere(y_true[..., 4] == 1.0)          # (N, 4): b, k, j, i
    n_assigned = int(idx.shape[0])
    spr = max(8, _ceil_to(max(n_assigned, 1), 8))
    sp_tgt_np = np.zeros((spr, 128), np.float32)
    sp_aux_np = np.zeros((spr, 128), np.float32)
    sp_pred = jnp.zeros((spr, 128), jnp.float32)
    if n_assigned > 0:
        b_i, k_i, j_i, i_i = idx[:, 0], idx[:, 1], idx[:, 2], idx[:, 3]
        sp_tgt_np[:n_assigned, :A] = y_true[b_i, k_i, j_i, i_i, :]
        sp_aux_np[:n_assigned, 0] = i_i.astype(np.float32)          # grid_x
        sp_aux_np[:n_assigned, 1] = j_i.astype(np.float32)          # grid_y
        anchor_ids = np.asarray(anchors_mask[l])[k_i]
        sp_aux_np[:n_assigned, 2] = scaled_anchors[anchor_ids, 0]   # anchor_w
        sp_aux_np[:n_assigned, 3] = scaled_anchors[anchor_ids, 1]   # anchor_h
        sp_aux_np[:n_assigned, 4] = 1.0                             # valid
        gathered = pred_v[b_i, k_i, :, j_i, i_i]                    # (N, A)
        sp_pred = sp_pred.at[:n_assigned, :A].set(gathered)
    sp_tgt = jnp.asarray(sp_tgt_np)
    sp_aux = jnp.asarray(sp_aux_np)

    # Pallas kernel -> per-batch (per-core) partial sums
    out = _dense_loss_call(gt_k, pred5, obj_k, noobj_k, grid_k,
                           sp_pred, sp_tgt, sp_aux,
                           num_classes=num_classes, t_max=t_max, tmr=tmr,
                           ignore_threshold=float(ignore_threshold))

    # tiny scalar epilogue over the per-batch partials (plain JAX on purpose)
    totals = jnp.sum(out[:, 0, :], axis=0)
    conf_sum, conf_cnt, n_obj = totals[0], totals[1], totals[2]
    loc_sum, cls_sum = totals[3], totals[4]
    safe_n = jnp.maximum(n_obj, 1.0)
    loss_pos = (loc_sum / safe_n) * box_ratio \
        + (cls_sum / (safe_n * float(num_classes))) * cls_ratio
    loss_conf = conf_sum / jnp.maximum(conf_cnt, 1.0)
    return jnp.where(n_obj > 0.0, loss_pos, 0.0) \
        + loss_conf * float(balance[l]) * float(obj_ratio)


# ----------------------------------------------------------------------------
# float64 numpy reference mirroring the PyTorch forward (dense formulation).
# ----------------------------------------------------------------------------
def reference_loss_np(l, x_np, targets, anchors, anchors_mask, num_classes,
                      input_shape, balance, box_ratio, obj_ratio, cls_ratio,
                      ignore_threshold):
    bs, _, in_h, in_w = x_np.shape
    na = len(anchors_mask[l])
    A = 5 + num_classes
    stride_h = input_shape[0] / in_h
    stride_w = input_shape[1] / in_w
    scaled_anchors = np.array([(aw / stride_w, ah / stride_h) for aw, ah in anchors],
                              dtype=np.float32)

    def sig(v):
        return 1.0 / (1.0 + np.exp(-v))

    def bce(p, t):
        p = np.clip(p, 1e-7, 1.0 - 1e-7)
        return -t * np.log(p) - (1.0 - t) * np.log(1.0 - p)

    pred = (x_np.reshape(bs, na, A, in_h, in_w)
            .transpose(0, 1, 3, 4, 2).astype(np.float64))
    x = sig(pred[..., 0]); y = sig(pred[..., 1])
    w = pred[..., 2]; h = pred[..., 3]
    conf = sig(pred[..., 4]); pred_cls = sig(pred[..., 5:])

    y_true, noobj = get_target_np(l, targets, scaled_anchors, in_h, in_w,
                                  anchors_mask, A)
    y_true = y_true.astype(np.float64)
    noobj = noobj.astype(np.float64)

    sa = scaled_anchors.astype(np.float64)
    gx = np.arange(in_w, dtype=np.float64)[None, None, None, :]
    gy = np.arange(in_h, dtype=np.float64)[None, None, :, None]
    aw = sa[anchors_mask[l], 0][None, :, None, None]
    ah = sa[anchors_mask[l], 1][None, :, None, None]
    px = x + gx; py = y + gy
    pw = np.exp(w) * aw; ph = np.exp(h) * ah

    for b in range(bs):
        if len(targets[b]) == 0:
            continue
        bt = np.asarray(targets[b], np.float64).copy()
        bt[:, [0, 2]] *= in_w
        bt[:, [1, 3]] *= in_h
        gx1 = bt[:, 0] - bt[:, 2] / 2; gx2 = bt[:, 0] + bt[:, 2] / 2
        gy1 = bt[:, 1] - bt[:, 3] / 2; gy2 = bt[:, 1] + bt[:, 3] / 2
        pxf = px[b].reshape(-1); pyf = py[b].reshape(-1)
        pwf = pw[b].reshape(-1); phf = ph[b].reshape(-1)
        px1 = pxf - pwf / 2; px2 = pxf + pwf / 2
        py1 = pyf - phf / 2; py2 = pyf + phf / 2
        iw = np.maximum(np.minimum(gx2[:, None], px2[None, :])
                        - np.maximum(gx1[:, None], px1[None, :]), 0.0)
        ih = np.maximum(np.minimum(gy2[:, None], py2[None, :])
                        - np.maximum(gy1[:, None], py1[None, :]), 0.0)
        inter = iw * ih
        union = ((gx2 - gx1) * (gy2 - gy1))[:, None] + (pwf * phf)[None, :] - inter
        iou_max = (inter / union).max(axis=0).reshape(na, in_h, in_w)
        noobj[b][iou_max > ignore_threshold] = 0.0

    tx = y_true[..., 0]; ty = y_true[..., 1]
    tw = y_true[..., 2]; th = y_true[..., 3]
    px1 = px - pw / 2; px2 = px + pw / 2
    py1 = py - ph / 2; py2 = py + ph / 2
    tx1 = tx - tw / 2; tx2 = tx + tw / 2
    ty1 = ty - th / 2; ty2 = ty + th / 2
    iw = np.maximum(np.minimum(px2, tx2) - np.maximum(px1, tx1), 0.0)
    ih = np.maximum(np.minimum(py2, ty2) - np.maximum(py1, ty1), 0.0)
    inter = iw * ih
    union = pw * ph + tw * th - inter
    iou = inter / union
    ew = np.maximum(np.maximum(px2, tx2) - np.minimum(px1, tx1), 0.0)
    eh = np.maximum(np.maximum(py2, ty2) - np.minimum(py1, ty1), 0.0)
    enclose = ew * eh
    giou = iou - (enclose - union) / enclose

    obj = y_true[..., 4] == 1.0
    n = obj.sum()
    loss = 0.0
    if n != 0:
        loss_loc = np.mean((1.0 - giou)[obj])
        loss_cls = np.mean(bce(pred_cls[obj], y_true[..., 5:][obj]))
        loss += loss_loc * box_ratio + loss_cls * cls_ratio
    mask = noobj.astype(bool) | obj
    loss_conf = np.mean(bce(conf, obj.astype(np.float64))[mask])
    loss += loss_conf * balance[l] * obj_ratio
    return loss


# ----------------------------------------------------------------------------
if __name__ == "__main__":
    # module configuration (mirrors Loss.__init__)
    anchors = [(10, 13), (16, 30), (33, 23), (30, 61), (62, 45),
               (59, 119), (116, 90), (156, 198), (373, 326)]
    anchors_mask = [[6, 7, 8], [3, 4, 5], [0, 1, 2]]
    num_classes = 4
    input_shape = (128, 128)
    l = 0                               # pyramid level
    balance = [0.4, 1.0, 4]
    box_ratio = 0.05
    obj_ratio = 5 * (input_shape[0] * input_shape[1]) / 416 ** 2
    cls_ratio = 1 * (num_classes / 80)
    ignore_threshold = 0.5

    bs, in_h, in_w = 2, 8, 8
    na = len(anchors_mask[l])
    A = 5 + num_classes

    # targets: list of (T, 5) arrays [cx, cy, w, h, cls] normalized to [0,1]
    # (sizes chosen so each GT's best anchor lies in anchors_mask[l])
    targets = [
        np.array([[0.30, 0.40, 0.80, 0.70, 1.0],
                  [0.65, 0.60, 0.90, 0.85, 3.0]], np.float32),
        np.array([[0.50, 0.50, 0.75, 0.95, 0.0],
                  [0.20, 0.75, 0.85, 0.65, 2.0]], np.float32),
    ]

    # deterministic feature-map input (NCHW, like the PyTorch conv output)
    key = jax.random.PRNGKey(0)
    x_in = 0.5 * jax.random.normal(key, (bs, na * A, in_h, in_w), dtype=jnp.float32)

    loss = yolo_loss_forward(
        l, x_in, targets,
        anchors=anchors, anchors_mask=anchors_mask, num_classes=num_classes,
        input_shape=input_shape, balance=balance, box_ratio=box_ratio,
        obj_ratio=obj_ratio, cls_ratio=cls_ratio,
        ignore_threshold=ignore_threshold)
    loss = jax.block_until_ready(loss)

    ref = reference_loss_np(
        l, np.asarray(x_in), targets, anchors, anchors_mask, num_classes,
        input_shape, balance, box_ratio, obj_ratio, cls_ratio, ignore_threshold)

    assert np.isfinite(float(loss)), "kernel produced non-finite loss"
    np.testing.assert_allclose(float(loss), float(ref), rtol=5e-3, atol=1e-4)
    print("KERNEL_OK")
</pallas_src>

<mosaic_0001>
module attributes {stable_mosaic.version = 11 : i64} {
  func.func @kernel(%arg0: i32, %arg1: i32, %arg2: memref<16xf32, #tpu.memory_space<smem>>, %arg3: memref<1x5x16x128xf32, #tpu.memory_space<vmem>>, %arg4: memref<1x16x128xbf16, #tpu.memory_space<vmem>>, %arg5: memref<1x16x128xbf16, #tpu.memory_space<vmem>>, %arg6: memref<4x16x128xf32, #tpu.memory_space<vmem>>, %arg7: memref<8x128xf32, #tpu.memory_space<vmem>>, %arg8: memref<8x128xf32, #tpu.memory_space<vmem>>, %arg9: memref<8x128xf32, #tpu.memory_space<vmem>>, %arg10: memref<1x8x128xf32, #tpu.memory_space<vmem>>) attributes {dimension_semantics = [#tpu.dimension_semantics<parallel>, #tpu.dimension_semantics<arbitrary>], iteration_bounds = array<i64: 2, 1>, scalar_prefetch = 0 : i64, scratch_operands = 0 : i64, tpu.core_type = #tpu.core_type<tc>, window_params = [{transform_indices = @transform_0, window_bounds = array<i64: 16>}, {transform_indices = @transform_1, window_bounds = array<i64: 1, 5, 16, 128>}, {transform_indices = @transform_2, window_bounds = array<i64: 1, 16, 128>}, {transform_indices = @transform_3, window_bounds = array<i64: 1, 16, 128>}, {transform_indices = @transform_4, window_bounds = array<i64: 4, 16, 128>}, {pipeline_mode = #tpu.pipeline_mode<synchronous>, transform_indices = @transform_5, window_bounds = array<i64: 8, 128>}, {pipeline_mode = #tpu.pipeline_mode<synchronous>, transform_indices = @transform_6, window_bounds = array<i64: 8, 128>}, {pipeline_mode = #tpu.pipeline_mode<synchronous>, transform_indices = @transform_7, window_bounds = array<i64: 8, 128>}, {transform_indices = @transform_8, window_bounds = array<i64: 1, 8, 128>}]} {
    %c0_i32 = arith.constant 0 : i32
    %0 = arith.cmpi eq, %arg1, %c0_i32 : i32
    %1 = arith.extui %0 : i1 to i32
    %c0_i32_0 = arith.constant 0 : i32
    %2 = arith.cmpi ne, %1, %c0_i32_0 : i32
    scf.if %2 {
      %cst_80 = arith.constant 0.000000e+00 : f32
      %196 = vector.broadcast %cst_80 : f32 to vector<8x128xf32>
      %c0_81 = arith.constant 0 : index
      %c0_82 = arith.constant 0 : index
      %c0_83 = arith.constant 0 : index
      %197 = vector.load %arg10[%c0_81, %c0_82, %c0_83] : memref<1x8x128xf32, #tpu.memory_space<vmem>>, vector<1x8x128xf32>
      %198 = vector.shape_cast %197 : vector<1x8x128xf32> to vector<8x128xf32>
      %199 = vector.shape_cast %196 : vector<8x128xf32> to vector<1x8x128xf32>
      tpu.vector_store %arg10[%c0_81, %c0_82, %c0_83], %199 {strides = array<i32>} : memref<1x8x128xf32, #tpu.memory_space<vmem>>, vector<1x8x128xf32>,
    } else {
    }
    %c0 = arith.constant 0 : index
    %c0_1 = arith.constant 0 : index
    %c0_2 = arith.constant 0 : index
    %3 = vector.load %arg4[%c0, %c0_1, %c0_2] : memref<1x16x128xbf16, #tpu.memory_space<vmem>>, vector<1x16x128xbf16>
    %4 = vector.shape_cast %3 : vector<1x16x128xbf16> to vector<16x128xbf16>
    %5 = arith.extf %4 : vector<16x128xbf16> to vector<16x128xf32>
    %c0_3 = arith.constant 0 : index
    %c0_4 = arith.constant 0 : index
    %c0_5 = arith.constant 0 : index
    %6 = vector.load %arg5[%c0_3, %c0_4, %c0_5] : memref<1x16x128xbf16, #tpu.memory_space<vmem>>, vector<1x16x128xbf16>
    %7 = vector.shape_cast %6 : vector<1x16x128xbf16> to vector<16x128xbf16>
    %8 = arith.extf %7 : vector<16x128xbf16> to vector<16x128xf32>
    %c0_6 = arith.constant 0 : index
    %c0_7 = arith.constant 0 : index
    %c0_8 = arith.constant 0 : index
    %9 = vector.load %arg6[%c0_6, %c0_7, %c0_8] : memref<4x16x128xf32, #tpu.memory_space<vmem>>, vector<1x16x128xf32>
    %10 = vector.shape_cast %9 : vector<1x16x128xf32> to vector<16x128xf32>
    %c1 = arith.constant 1 : index
    %c0_9 = arith.constant 0 : index
    %c0_10 = arith.constant 0 : index
    %11 = vector.load %arg6[%c1, %c0_9, %c0_10] : memref<4x16x128xf32, #tpu.memory_space<vmem>>, vector<1x16x128xf32>
    %12 = vector.shape_cast %11 : vector<1x16x128xf32> to vector<16x128xf32>
    %c2 = arith.constant 2 : index
    %c0_11 = arith.constant 0 : index
    %c0_12 = arith.constant 0 : index
    %13 = vector.load %arg6[%c2, %c0_11, %c0_12] : memref<4x16x128xf32, #tpu.memory_space<vmem>>, vector<1x16x128xf32>
    %14 = vector.shape_cast %13 : vector<1x16x128xf32> to vector<16x128xf32>
    %c3 = arith.constant 3 : index
    %c0_13 = arith.constant 0 : index
    %c0_14 = arith.constant 0 : index
    %15 = vector.load %arg6[%c3, %c0_13, %c0_14] : memref<4x16x128xf32, #tpu.memory_space<vmem>>, vector<1x16x128xf32>
    %16 = vector.shape_cast %15 : vector<1x16x128xf32> to vector<16x128xf32>
    %c0_15 = arith.constant 0 : index
    %c0_16 = arith.constant 0 : index
    %c0_17 = arith.constant 0 : index
    %c0_18 = arith.constant 0 : index
    %17 = vector.load %arg3[%c0_15, %c0_16, %c0_17, %c0_18] : memref<1x5x16x128xf32, #tpu.memory_space<vmem>>, vector<1x1x16x128xf32>
    %18 = vector.shape_cast %17 : vector<1x1x16x128xf32> to vector<16x128xf32>
    %19 = arith.negf %18 : vector<16x128xf32>
    %20 = math.exp %19 : vector<16x128xf32>
    %cst = arith.constant 1.000000e+00 : f32
    %21 = vector.broadcast %cst : f32 to vector<16x128xf32>
    %22 = arith.addf %21, %20 : vector<16x128xf32>
    %23 = arith.divf %21, %22 : vector<16x128xf32>
    %24 = arith.addf %23, %10 : vector<16x128xf32>
    %c0_19 = arith.constant 0 : index
    %c1_20 = arith.constant 1 : index
    %c0_21 = arith.constant 0 : index
    %c0_22 = arith.constant 0 : index
    %25 = vector.load %arg3[%c0_19, %c1_20, %c0_21, %c0_22] : memref<1x5x16x128xf32, #tpu.memory_space<vmem>>, vector<1x1x16x128xf32>
    %26 = vector.shape_cast %25 : vector<1x1x16x128xf32> to vector<16x128xf32>
    %27 = arith.negf %26 : vector<16x128xf32>
    %28 = math.exp %27 : vector<16x128xf32>
    %cst_23 = arith.constant 1.000000e+00 : f32
    %29 = vector.broadcast %cst_23 : f32 to vector<16x128xf32>
    %30 = arith.addf %29, %28 : vector<16x128xf32>
    %31 = arith.divf %29, %30 : vector<16x128xf32>
    %32 = arith.addf %31, %12 : vector<16x128xf32>
    %c0_24 = arith.constant 0 : index
    %c2_25 = arith.constant 2 : index
    %c0_26 = arith.constant 0 : index
    %c0_27 = arith.constant 0 : index
    %33 = vector.load %arg3[%c0_24, %c2_25, %c0_26, %c0_27] : memref<1x5x16x128xf32, #tpu.memory_space<vmem>>, vector<1x1x16x128xf32>
    %34 = vector.shape_cast %33 : vector<1x1x16x128xf32> to vector<16x128xf32>
    %35 = math.exp %34 : vector<16x128xf32>
    %36 = arith.mulf %35, %14 : vector<16x128xf32>
    %c0_28 = arith.constant 0 : index
    %c3_29 = arith.constant 3 : index
    %c0_30 = arith.constant 0 : index
    %c0_31 = arith.constant 0 : index
    %37 = vector.load %arg3[%c0_28, %c3_29, %c0_30, %c0_31] : memref<1x5x16x128xf32, #tpu.memory_space<vmem>>, vector<1x1x16x128xf32>
    %38 = vector.shape_cast %37 : vector<1x1x16x128xf32> to vector<16x128xf32>
    %39 = math.exp %38 : vector<16x128xf32>
    %40 = arith.mulf %39, %16 : vector<16x128xf32>
    %cst_32 = arith.constant 5.000000e-01 : f32
    %41 = vector.broadcast %cst_32 : f32 to vector<16x128xf32>
    %42 = arith.mulf %41, %36 : vector<16x128xf32>
    %43 = arith.subf %24, %42 : vector<16x128xf32>
    %cst_33 = arith.constant 5.000000e-01 : f32
    %44 = vector.broadcast %cst_33 : f32 to vector<16x128xf32>
    %45 = arith.mulf %44, %36 : vector<16x128xf32>
    %46 = arith.addf %24, %45 : vector<16x128xf32>
    %cst_34 = arith.constant 5.000000e-01 : f32
    %47 = vector.broadcast %cst_34 : f32 to vector<16x128xf32>
    %48 = arith.mulf %47, %40 : vector<16x128xf32>
    %49 = arith.subf %32, %48 : vector<16x128xf32>
    %cst_35 = arith.constant 5.000000e-01 : f32
    %50 = vector.broadcast %cst_35 : f32 to vector<16x128xf32>
    %51 = arith.mulf %50, %40 : vector<16x128xf32>
    %52 = arith.addf %32, %51 : vector<16x128xf32>
    %53 = arith.mulf %36, %40 : vector<16x128xf32>
    %cst_36 = arith.constant 0.000000e+00 : f32
    %54 = vector.broadcast %cst_36 : f32 to vector<16x128xf32>
    %c0_i32_37 = arith.constant 0 : i32
    %c2_i32 = arith.constant 2 : i32
    %55 = arith.muli %arg0, %c2_i32 : i32
    %56 = arith.addi %55, %c0_i32_37 : i32
    %c4_i32 = arith.constant 4 : i32
    %57 = arith.muli %56, %c4_i32 : i32
    %c0_i32_38 = arith.constant 0 : i32
    %58 = arith.addi %57, %c0_i32_38 : i32
    %59 = arith.index_cast %58 : i32 to index
    %60 = memref.load %arg2[%59] : memref<16xf32, #tpu.memory_space<smem>>
    %c1_i32 = arith.constant 1 : i32
    %61 = arith.addi %57, %c1_i32 : i32
    %62 = arith.index_cast %61 : i32 to index
    %63 = memref.load %arg2[%62] : memref<16xf32, #tpu.memory_space<smem>>
    %c2_i32_39 = arith.constant 2 : i32
    %64 = arith.addi %57, %c2_i32_39 : i32
    %65 = arith.index_cast %64 : i32 to index
    %66 = memref.load %arg2[%65] : memref<16xf32, #tpu.memory_space<smem>>
    %c3_i32 = arith.constant 3 : i32
    %67 = arith.addi %57, %c3_i32 : i32
    %68 = arith.index_cast %67 : i32 to index
    %69 = memref.load %arg2[%68] : memref<16xf32, #tpu.memory_space<smem>>
    %70 = arith.subf %66, %60 : f32
    %71 = arith.subf %69, %63 : f32
    %72 = arith.mulf %70, %71 : f32
    %73 = vector.broadcast %66 : f32 to vector<16x128xf32>
    %74 = arith.minimumf %73, %46 : vector<16x128xf32>
    %75 = vector.broadcast %60 : f32 to vector<16x128xf32>
    %76 = arith.maximumf %75, %43 : vector<16x128xf32>
    %77 = arith.subf %74, %76 : vector<16x128xf32>
    %cst_40 = arith.constant 0.000000e+00 : f32
    %78 = vector.broadcast %cst_40 : f32 to vector<16x128xf32>
    %79 = arith.maximumf %77, %78 : vector<16x128xf32>
    %80 = vector.broadcast %69 : f32 to vector<16x128xf32>
    %81 = arith.minimumf %80, %52 : vector<16x128xf32>
    %82 = vector.broadcast %63 : f32 to vector<16x128xf32>
    %83 = arith.maximumf %82, %49 : vector<16x128xf32>
    %84 = arith.subf %81, %83 : vector<16x128xf32>
    %cst_41 = arith.constant 0.000000e+00 : f32
    %85 = vector.broadcast %cst_41 : f32 to vector<16x128xf32>
    %86 = arith.maximumf %84, %85 : vector<16x128xf32>
    %87 = arith.mulf %79, %86 : vector<16x128xf32>
    %88 = vector.broadcast %72 : f32 to vector<16x128xf32>
    %89 = arith.addf %88, %53 : vector<16x128xf32>
    %90 = arith.subf %89, %87 : vector<16x128xf32>
    %cst_42 = arith.constant 9.99999971E-10 : f32
    %91 = vector.broadcast %cst_42 : f32 to vector<16x128xf32>
    %92 = arith.addf %90, %91 : vector<16x128xf32>
    %93 = arith.divf %87, %92 : vector<16x128xf32>
    %94 = arith.maximumf %54, %93 : vector<16x128xf32>
    %c1_i32_43 = arith.constant 1 : i32
    %c2_i32_44 = arith.constant 2 : i32
    %95 = arith.muli %arg0, %c2_i32_44 : i32
    %96 = arith.addi %95, %c1_i32_43 : i32
    %c4_i32_45 = arith.constant 4 : i32
    %97 = arith.muli %96, %c4_i32_45 : i32
    %c0_i32_46 = arith.constant 0 : i32
    %98 = arith.addi %97, %c0_i32_46 : i32
    %99 = arith.index_cast %98 : i32 to index
    %100 = memref.load %arg2[%99] : memref<16xf32, #tpu.memory_space<smem>>
    %c1_i32_47 = arith.constant 1 : i32
    %101 = arith.addi %97, %c1_i32_47 : i32
    %102 = arith.index_cast %101 : i32 to index
    %103 = memref.load %arg2[%102] : memref<16xf32, #tpu.memory_space<smem>>
    %c2_i32_48 = arith.constant 2 : i32
    %104 = arith.addi %97, %c2_i32_48 : i32
    %105 = arith.index_cast %104 : i32 to index
    %106 = memref.load %arg2[%105] : memref<16xf32, #tpu.memory_space<smem>>
    %c3_i32_49 = arith.constant 3 : i32
    %107 = arith.addi %97, %c3_i32_49 : i32
    %108 = arith.index_cast %107 : i32 to index
    %109 = memref.load %arg2[%108] : memref<16xf32, #tpu.memory_space<smem>>
    %110 = arith.subf %106, %100 : f32
    %111 = arith.subf %109, %103 : f32
    %112 = arith.mulf %110, %111 : f32
    %113 = vector.broadcast %106 : f32 to vector<16x128xf32>
    %114 = arith.minimumf %113, %46 : vector<16x128xf32>
    %115 = vector.broadcast %100 : f32 to vector<16x128xf32>
    %116 = arith.maximumf %115, %43 : vector<16x128xf32>
    %117 = arith.subf %114, %116 : vector<16x128xf32>
    %cst_50 = arith.constant 0.000000e+00 : f32
    %118 = vector.broadcast %cst_50 : f32 to vector<16x128xf32>
    %119 = arith.maximumf %117, %118 : vector<16x128xf32>
    %120 = vector.broadcast %109 : f32 to vector<16x128xf32>
    %121 = arith.minimumf %120, %52 : vector<16x128xf32>
    %122 = vector.broadcast %103 : f32 to vector<16x128xf32>
    %123 = arith.maximumf %122, %49 : vector<16x128xf32>
    %124 = arith.subf %121, %123 : vector<16x128xf32>
    %cst_51 = arith.constant 0.000000e+00 : f32
    %125 = vector.broadcast %cst_51 : f32 to vector<16x128xf32>
    %126 = arith.maximumf %124, %125 : vector<16x128xf32>
    %127 = arith.mulf %119, %126 : vector<16x128xf32>
    %128 = vector.broadcast %112 : f32 to vector<16x128xf32>
    %129 = arith.addf %128, %53 : vector<16x128xf32>
    %130 = arith.subf %129, %127 : vector<16x128xf32>
    %cst_52 = arith.constant 9.99999971E-10 : f32
    %131 = vector.broadcast %cst_52 : f32 to vector<16x128xf32>
    %132 = arith.addf %130, %131 : vector<16x128xf32>
    %133 = arith.divf %127, %132 : vector<16x128xf32>
    %134 = arith.maximumf %94, %133 : vector<16x128xf32>
    %c2_i32_53 = arith.constant 2 : i32
    %cst_54 = arith.constant 5.000000e-01 : f32
    %135 = vector.broadcast %cst_54 : f32 to vector<16x128xf32>
    %136 = arith.cmpf ogt, %134, %135 : vector<16x128xf32>
    %cst_55 = arith.constant 0.000000e+00 : f32
    %137 = vector.broadcast %cst_55 : f32 to vector<16x128xf32>
    %138 = arith.select %136, %137, %8 : vector<16x128xi1>, vector<16x128xf32>
    %139 = arith.maximumf %138, %5 : vector<16x128xf32>
    %c0_56 = arith.constant 0 : index
    %c4 = arith.constant 4 : index
    %c0_57 = arith.constant 0 : index
    %c0_58 = arith.constant 0 : index
    %140 = vector.load %arg3[%c0_56, %c4, %c0_57, %c0_58] : memref<1x5x16x128xf32, #tpu.memory_space<vmem>>, vector<1x1x16x128xf32>
    %141 = vector.shape_cast %140 : vector<1x1x16x128xf32> to vector<16x128xf32>
    %cst_59 = arith.constant 0.000000e+00 : f32
    %142 = vector.broadcast %cst_59 : f32 to vector<16x128xf32>
    %143 = arith.maximumf %141, %142 : vector<16x128xf32>
    %144 = arith.mulf %141, %5 : vector<16x128xf32>
    %145 = arith.subf %143, %144 : vector<16x128xf32>
    %146 = math.absf %141 : vector<16x128xf32>
    %cst_60 = arith.constant 0.000000e+00 : f32
    %147 = vector.broadcast %cst_60 : f32 to vector<16x128xf32>
    %148 = arith.subf %147, %146 : vector<16x128xf32>
    %149 = math.exp %148 : vector<16x128xf32>
    %cst_61 = arith.constant 1.000000e+00 : f32
    %150 = vector.broadcast %cst_61 : f32 to vector<16x128xf32>
    %151 = arith.addf %150, %149 : vector<16x128xf32>
    %152 = math.log %151 : vector<16x128xf32>
    %153 = arith.addf %145, %152 : vector<16x128xf32>
    %154 = arith.mulf %139, %153 : vector<16x128xf32>
    %155 = vector.shape_cast %154 : vector<16x128xf32> to vector<1x16x128xf32>
    %cst_62 = arith.constant dense<0.000000e+00> : vector<1xf32>
    %156 = vector.multi_reduction <add>, %155, %cst_62 [1, 2] : vector<1x16x128xf32> to vector<1xf32>
    %157 = vector.shape_cast %156 : vector<1xf32> to vector<1x1x1xf32>
    %158 = vector.extract %157[0, 0, 0] : f32 from vector<1x1x1xf32>
    %159 = vector.shape_cast %139 : vector<16x128xf32> to vector<1x16x128xf32>
    %cst_63 = arith.constant dense<0.000000e+00> : vector<1xf32>
    %160 = vector.multi_reduction <add>, %159, %cst_63 [1, 2] : vector<1x16x128xf32> to vector<1xf32>
    %161 = vector.shape_cast %160 : vector<1xf32> to vector<1x1x1xf32>
    %162 = vector.extract %161[0, 0, 0] : f32 from vector<1x1x1xf32>
    %163 = vector.shape_cast %5 : vector<16x128xf32> to vector<1x16x128xf32>
    %cst_64 = arith.constant dense<0.000000e+00> : vector<1xf32>
    %164 = vector.multi_reduction <add>, %163, %cst_64 [1, 2] : vector<1x16x128xf32> to vector<1xf32>
    %165 = vector.shape_cast %164 : vector<1xf32> to vector<1x1x1xf32>
    %166 = vector.extract %165[0, 0, 0] : f32 from vector<1x1x1xf32>
    %167 = tpu.iota {dimensions = array<i32: 1>} : vector<8x128xi32>
    %c0_65 = arith.constant 0 : index
    %c0_66 = arith.constant 0 : index
    %c0_67 = arith.constant 0 : index
    %168 = vector.load %arg10[%c0_65, %c0_66, %c0_67] : memref<1x8x128xf32, #tpu.memory_space<vmem>>, vector<1x8x128xf32>
    %169 = vector.shape_cast %168 : vector<1x8x128xf32> to vector<8x128xf32>
    %c0_i32_68 = arith.constant 0 : i32
    %170 = vector.broadcast %c0_i32_68 : i32 to vector<8x128xi32>
    %171 = arith.cmpi eq, %167, %170 : vector<8x128xi32>
    %cst_69 = arith.constant 0.000000e+00 : f32
    %172 = vector.broadcast %158 : f32 to vector<8x128xf32>
    %173 = vector.broadcast %cst_69 : f32 to vector<8x128xf32>
    %174 = arith.select %171, %172, %173 : vector<8x128xi1>, vector<8x128xf32>
    %c1_i32_70 = arith.constant 1 : i32
    %175 = vector.broadcast %c1_i32_70 : i32 to vector<8x128xi32>
    %176 = arith.cmpi eq, %167, %175 : vector<8x128xi32>
    %cst_71 = arith.constant 0.000000e+00 : f32
    %177 = vector.broadcast %162 : f32 to vector<8x128xf32>
    %178 = vector.broadcast %cst_71 : f32 to vector<8x128xf32>
    %179 = arith.select %176, %177, %178 : vector<8x128xi1>, vector<8x128xf32>
    %180 = arith.addf %174, %179 : vector<8x128xf32>
    %c2_i32_72 = arith.constant 2 : i32
    %181 = vector.broadcast %c2_i32_72 : i32 to vector<8x128xi32>
    %182 = arith.cmpi eq, %167, %181 : vector<8x128xi32>
    %cst_73 = arith.constant 0.000000e+00 : f32
    %183 = vector.broadcast %166 : f32 to vector<8x128xf32>
    %184 = vector.broadcast %cst_73 : f32 to vector<8x128xf32>
    %185 = arith.select %182, %183, %184 : vector<8x128xi1>, vector<8x128xf32>
    %186 = arith.addf %180, %185 : vector<8x128xf32>
    %187 = arith.addf %169, %186 : vector<8x128xf32>
    %c0_74 = arith.constant 0 : index
    %c0_75 = arith.constant 0 : index
    %c0_76 = arith.constant 0 : index
    %188 = vector.load %arg10[%c0_74, %c0_75, %c0_76] : memref<1x8x128xf32, #tpu.memory_space<vmem>>, vector<1x8x128xf32>
    %189 = vector.shape_cast %188 : vector<1x8x128xf32> to vector<8x128xf32>
    %190 = vector.shape_cast %187 : vector<8x128xf32> to vector<1x8x128xf32>
    tpu.vector_store %arg10[%c0_74, %c0_75, %c0_76], %190 {strides = array<i32>} : memref<1x8x128xf32, #tpu.memory_space<vmem>>, vector<1x8x128xf32>,
    %c0_i32_77 = arith.constant 0 : i32
    %191 = arith.cmpi eq, %arg0, %c0_i32_77 : i32
    %c0_i32_78 = arith.constant 0 : i32
    %192 = arith.cmpi eq, %arg1, %c0_i32_78 : i32
    %193 = arith.andi %191, %192 : i1
    %194 = arith.extui %193 : i1 to i32
    %c0_i32_79 = arith.constant 0 : i32
    %195 = arith.cmpi ne, %194, %c0_i32_79 : i32
    scf.if %195 {
      %c0_80 = arith.constant 0 : index
      %c0_81 = arith.constant 0 : index
      %196 = vector.load %arg7[%c0_80, %c0_81] : memref<8x128xf32, #tpu.memory_space<vmem>>, vector<8x128xf32>
      %c0_82 = arith.constant 0 : index
      %c0_83 = arith.constant 0 : index
      %197 = vector.load %arg8[%c0_82, %c0_83] : memref<8x128xf32, #tpu.memory_space<vmem>>, vector<8x128xf32>
      %c0_84 = arith.constant 0 : index
      %c0_85 = arith.constant 0 : index
      %198 = vector.load %arg9[%c0_84, %c0_85] : memref<8x128xf32, #tpu.memory_space<vmem>>, vector<8x128xf32>
      %199 = vector.extract_strided_slice %198 {offsets = [0, 4], sizes = [8, 1], strides = [1, 1]} : vector<8x128xf32> to vector<8x1xf32>
      %200 = vector.extract_strided_slice %196 {offsets = [0, 0], sizes = [8, 1], strides = [1, 1]} : vector<8x128xf32> to vector<8x1xf32>
      %201 = arith.negf %200 : vector<8x1xf32>
      %202 = math.exp %201 : vector<8x1xf32>
      %cst_86 = arith.constant 1.000000e+00 : f32
      %203 = vector.broadcast %cst_86 : f32 to vector<8x1xf32>
      %204 = arith.addf %203, %202 : vector<8x1xf32>
      %205 = arith.divf %203, %204 : vector<8x1xf32>
      %206 = vector.extract_strided_slice %198 {offsets = [0, 0], sizes = [8, 1], strides = [1, 1]} : vector<8x128xf32> to vector<8x1xf32>
      %207 = arith.addf %205, %206 : vector<8x1xf32>
      %208 = vector.extract_strided_slice %196 {offsets = [0, 1], sizes = [8, 1], strides = [1, 1]} : vector<8x128xf32> to vector<8x1xf32>
      %209 = arith.negf %208 : vector<8x1xf32>
      %210 = math.exp %209 : vector<8x1xf32>
      %cst_87 = arith.constant 1.000000e+00 : f32
      %211 = vector.broadcast %cst_87 : f32 to vector<8x1xf32>
      %212 = arith.addf %211, %210 : vector<8x1xf32>
      %213 = arith.divf %211, %212 : vector<8x1xf32>
      %214 = vector.extract_strided_slice %198 {offsets = [0, 1], sizes = [8, 1], strides = [1, 1]} : vector<8x128xf32> to vector<8x1xf32>
      %215 = arith.addf %213, %214 : vector<8x1xf32>
      %216 = vector.extract_strided_slice %196 {offsets = [0, 2], sizes = [8, 1], strides = [1, 1]} : vector<8x128xf32> to vector<8x1xf32>
      %217 = math.exp %216 : vector<8x1xf32>
      %218 = vector.extract_strided_slice %198 {offsets = [0, 2], sizes = [8, 1], strides = [1, 1]} : vector<8x128xf32> to vector<8x1xf32>
      %219 = arith.mulf %217, %218 : vector<8x1xf32>
      %220 = vector.extract_strided_slice %196 {offsets = [0, 3], sizes = [8, 1], strides = [1, 1]} : vector<8x128xf32> to vector<8x1xf32>
      %221 = math.exp %220 : vector<8x1xf32>
      %222 = vector.extract_strided_slice %198 {offsets = [0, 3], sizes = [8, 1], strides = [1, 1]} : vector<8x128xf32> to vector<8x1xf32>
      %223 = arith.mulf %221, %222 : vector<8x1xf32>
      %224 = vector.extract_strided_slice %197 {offsets = [0, 0], sizes = [8, 1], strides = [1, 1]} : vector<8x128xf32> to vector<8x1xf32>
      %225 = vector.extract_strided_slice %197 {offsets = [0, 1], sizes = [8, 1], strides = [1, 1]} : vector<8x128xf32> to vector<8x1xf32>
      %226 = vector.extract_strided_slice %197 {offsets = [0, 2], sizes = [8, 1], strides = [1, 1]} : vector<8x128xf32> to vector<8x1xf32>
      %227 = vector.extract_strided_slice %197 {offsets = [0, 3], sizes = [8, 1], strides = [1, 1]} : vector<8x128xf32> to vector<8x1xf32>
      %cst_88 = arith.constant 5.000000e-01 : f32
      %228 = vector.broadcast %cst_88 : f32 to vector<8x1xf32>
      %229 = arith.mulf %228, %219 : vector<8x1xf32>
      %230 = arith.subf %207, %229 : vector<8x1xf32>
      %cst_89 = arith.constant 5.000000e-01 : f32
      %231 = vector.broadcast %cst_89 : f32 to vector<8x1xf32>
      %232 = arith.mulf %231, %219 : vector<8x1xf32>
      %233 = arith.addf %207, %232 : vector<8x1xf32>
      %cst_90 = arith.constant 5.000000e-01 : f32
      %234 = vector.broadcast %cst_90 : f32 to vector<8x1xf32>
      %235 = arith.mulf %234, %223 : vector<8x1xf32>
      %236 = arith.subf %215, %235 : vector<8x1xf32>
      %cst_91 = arith.constant 5.000000e-01 : f32
      %237 = vector.broadcast %cst_91 : f32 to vector<8x1xf32>
      %238 = arith.mulf %237, %223 : vector<8x1xf32>
      %239 = arith.addf %215, %238 : vector<8x1xf32>
      %cst_92 = arith.constant 5.000000e-01 : f32
      %240 = vector.broadcast %cst_92 : f32 to vector<8x1xf32>
      %241 = arith.mulf %240, %226 : vector<8x1xf32>
      %242 = arith.subf %224, %241 : vector<8x1xf32>
      %cst_93 = arith.constant 5.000000e-01 : f32
      %243 = vector.broadcast %cst_93 : f32 to vector<8x1xf32>
      %244 = arith.mulf %243, %226 : vector<8x1xf32>
      %245 = arith.addf %224, %244 : vector<8x1xf32>
      %cst_94 = arith.constant 5.000000e-01 : f32
      %246 = vector.broadcast %cst_94 : f32 to vector<8x1xf32>
      %247 = arith.mulf %246, %227 : vector<8x1xf32>
      %248 = arith.subf %225, %247 : vector<8x1xf32>
      %cst_95 = arith.constant 5.000000e-01 : f32
      %249 = vector.broadcast %cst_95 : f32 to vector<8x1xf32>
      %250 = arith.mulf %249, %227 : vector<8x1xf32>
      %251 = arith.addf %225, %250 : vector<8x1xf32>
      %252 = arith.minimumf %233, %245 : vector<8x1xf32>
      %253 = arith.maximumf %230, %242 : vector<8x1xf32>
      %254 = arith.subf %252, %253 : vector<8x1xf32>
      %cst_96 = arith.constant 0.000000e+00 : f32
      %255 = vector.broadcast %cst_96 : f32 to vector<8x1xf32>
      %256 = arith.maximumf %254, %255 : vector<8x1xf32>
      %257 = arith.minimumf %239, %251 : vector<8x1xf32>
      %258 = arith.maximumf %236, %248 : vector<8x1xf32>
      %259 = arith.subf %257, %258 : vector<8x1xf32>
      %cst_97 = arith.constant 0.000000e+00 : f32
      %260 = vector.broadcast %cst_97 : f32 to vector<8x1xf32>
      %261 = arith.maximumf %259, %260 : vector<8x1xf32>
      %262 = arith.mulf %256, %261 : vector<8x1xf32>
      %263 = arith.mulf %219, %223 : vector<8x1xf32>
      %264 = arith.mulf %226, %227 : vector<8x1xf32>
      %265 = arith.addf %263, %264 : vector<8x1xf32>
      %266 = arith.subf %265, %262 : vector<8x1xf32>
      %cst_98 = arith.constant 9.99999971E-10 : f32
      %267 = vector.broadcast %cst_98 : f32 to vector<8x1xf32>
      %268 = arith.addf %266, %267 : vector<8x1xf32>
      %269 = arith.divf %262, %268 : vector<8x1xf32>
      %270 = arith.maximumf %233, %245 : vector<8x1xf32>
      %271 = arith.minimumf %230, %242 : vector<8x1xf32>
      %272 = arith.subf %270, %271 : vector<8x1xf32>
      %cst_99 = arith.constant 0.000000e+00 : f32
      %273 = vector.broadcast %cst_99 : f32 to vector<8x1xf32>
      %274 = arith.maximumf %272, %273 : vector<8x1xf32>
      %275 = arith.maximumf %239, %251 : vector<8x1xf32>
      %276 = arith.minimumf %236, %248 : vector<8x1xf32>
      %277 = arith.subf %275, %276 : vector<8x1xf32>
      %cst_100 = arith.constant 0.000000e+00 : f32
      %278 = vector.broadcast %cst_100 : f32 to vector<8x1xf32>
      %279 = arith.maximumf %277, %278 : vector<8x1xf32>
      %280 = arith.mulf %274, %279 : vector<8x1xf32>
      %281 = arith.subf %280, %266 : vector<8x1xf32>
      %cst_101 = arith.constant 9.99999971E-10 : f32
      %282 = vector.broadcast %cst_101 : f32 to vector<8x1xf32>
      %283 = arith.addf %280, %282 : vector<8x1xf32>
      %284 = arith.divf %281, %283 : vector<8x1xf32>
      %285 = arith.subf %269, %284 : vector<8x1xf32>
      %cst_102 = arith.constant 1.000000e+00 : f32
      %286 = vector.broadcast %cst_102 : f32 to vector<8x1xf32>
      %287 = arith.subf %286, %285 : vector<8x1xf32>
      %288 = arith.mulf %199, %287 : vector<8x1xf32>
      %289 = vector.shape_cast %288 : vector<8x1xf32> to vector<1x8x1xf32>
      %cst_103 = arith.constant dense<0.000000e+00> : vector<1xf32>
      %290 = vector.multi_reduction <add>, %289, %cst_103 [1, 2] : vector<1x8x1xf32> to vector<1xf32>
      %291 = vector.shape_cast %290 : vector<1xf32> to vector<1x1x1xf32>
      %292 = vector.extract %291[0, 0, 0] : f32 from vector<1x1x1xf32>
      %293 = tpu.iota {dimensions = array<i32: 1>} : vector<8x128xi32>
      %c5_i32 = arith.constant 5 : i32
      %294 = vector.broadcast %c5_i32 : i32 to vector<8x128xi32>
      %295 = arith.cmpi sge, %293, %294 : vector<8x128xi32>
      %c9_i32 = arith.constant 9 : i32
      %296 = vector.broadcast %c9_i32 : i32 to vector<8x128xi32>
      %297 = arith.cmpi slt, %293, %296 : vector<8x128xi32>
      %298 = arith.andi %295, %297 : vector<8x128xi1>
      %299 = arith.extui %298 : vector<8x128xi1> to vector<8x128xi32>
      %300 = arith.sitofp %299 : vector<8x128xi32> to vector<8x128xf32>
      %301 = vector.broadcast %199 : vector<8x1xf32> to vector<8x128xf32>
      %302 = arith.mulf %300, %301 : vector<8x128xf32>
      %cst_104 = arith.constant 0.000000e+00 : f32
      %303 = vector.broadcast %cst_104 : f32 to vector<8x128xf32>
      %304 = arith.maximumf %196, %303 : vector<8x128xf32>
      %305 = arith.mulf %196, %197 : vector<8x128xf32>
      %306 = arith.subf %304, %305 : vector<8x128xf32>
      %307 = math.absf %196 : vector<8x128xf32>
      %cst_105 = arith.constant 0.000000e+00 : f32
      %308 = vector.broadcast %cst_105 : f32 to vector<8x128xf32>
      %309 = arith.subf %308, %307 : vector<8x128xf32>
      %310 = math.exp %309 : vector<8x128xf32>
      %cst_106 = arith.constant 1.000000e+00 : f32
      %311 = vector.broadcast %cst_106 : f32 to vector<8x128xf32>
      %312 = arith.addf %311, %310 : vector<8x128xf32>
      %313 = math.log %312 : vector<8x128xf32>
      %314 = arith.addf %306, %313 : vector<8x128xf32>
      %315 = arith.mulf %302, %314 : vector<8x128xf32>
      %316 = vector.shape_cast %315 : vector<8x128xf32> to vector<1x8x128xf32>
      %cst_107 = arith.constant dense<0.000000e+00> : vector<1xf32>
      %317 = vector.multi_reduction <add>, %316, %cst_107 [1, 2] : vector<1x8x128xf32> to vector<1xf32>
      %318 = vector.shape_cast %317 : vector<1xf32> to vector<1x1x1xf32>
      %319 = vector.extract %318[0, 0, 0] : f32 from vector<1x1x1xf32>
      %c0_108 = arith.constant 0 : index
      %c0_109 = arith.constant 0 : index
      %c0_110 = arith.constant 0 : index
      %320 = vector.load %arg10[%c0_108, %c0_109, %c0_110] : memref<1x8x128xf32, #tpu.memory_space<vmem>>, vector<1x8x128xf32>
      %321 = vector.shape_cast %320 : vector<1x8x128xf32> to vector<8x128xf32>
      %c3_i32_111 = arith.constant 3 : i32
      %322 = vector.broadcast %c3_i32_111 : i32 to vector<8x128xi32>
      %323 = arith.cmpi eq, %167, %322 : vector<8x128xi32>
      %cst_112 = arith.constant 0.000000e+00 : f32
      %324 = vector.broadcast %292 : f32 to vector<8x128xf32>
      %325 = vector.broadcast %cst_112 : f32 to vector<8x128xf32>
      %326 = arith.select %323, %324, %325 : vector<8x128xi1>, vector<8x128xf32>
      %c4_i32_113 = arith.constant 4 : i32
      %327 = vector.broadcast %c4_i32_113 : i32 to vector<8x128xi32>
      %328 = arith.cmpi eq, %167, %327 : vector<8x128xi32>
      %cst_114 = arith.constant 0.000000e+00 : f32
      %329 = vector.broadcast %319 : f32 to vector<8x128xf32>
      %330 = vector.broadcast %cst_114 : f32 to vector<8x128xf32>
      %331 = arith.select %328, %329, %330 : vector<8x128xi1>, vector<8x128xf32>
      %332 = arith.addf %326, %331 : vector<8x128xf32>
      %333 = arith.addf %321, %332 : vector<8x128xf32>
      %c0_115 = arith.constant 0 : index
      %c0_116 = arith.constant 0 : index
      %c0_117 = arith.constant 0 : index
      %334 = vector.load %arg10[%c0_115, %c0_116, %c0_117] : memref<1x8x128xf32, #tpu.memory_space<vmem>>, vector<1x8x128xf32>
      %335 = vector.shape_cast %334 : vector<1x8x128xf32> to vector<8x128xf32>
      %336 = vector.shape_cast %333 : vector<8x128xf32> to vector<1x8x128xf32>
      tpu.vector_store %arg10[%c0_115, %c0_116, %c0_117], %336 {strides = array<i32>} : memref<1x8x128xf32, #tpu.memory_space<vmem>>, vector<1x8x128xf32>,
    } else {
    }
    return
  }
  func.func @transform_0(%arg0: i32, %arg1: i32) -> i32 {
    %c0_i32 = arith.constant 0 : i32
    %c0_i32_0 = arith.constant 0 : i32
    return %c0_i32 : i32
  }
  func.func @transform_1(%arg0: i32, %arg1: i32) -> (i32, i32, i32, i32) {
    %c0_i32 = arith.constant 0 : i32
    %c0_i32_0 = arith.constant 0 : i32
    %c0_i32_1 = arith.constant 0 : i32
    return %arg0, %c0_i32, %arg1, %c0_i32_0 : i32, i32, i32, i32
  }
  func.func @transform_2(%arg0: i32, %arg1: i32) -> (i32, i32, i32) {
    %c0_i32 = arith.constant 0 : i32
    %c0_i32_0 = arith.constant 0 : i32
    return %arg0, %arg1, %c0_i32 : i32, i32, i32
  }
  func.func @transform_3(%arg0: i32, %arg1: i32) -> (i32, i32, i32) {
    %c0_i32 = arith.constant 0 : i32
    %c0_i32_0 = arith.constant 0 : i32
    return %arg0, %arg1, %c0_i32 : i32, i32, i32
  }
  func.func @transform_4(%arg0: i32, %arg1: i32) -> (i32, i32, i32) {
    %c0_i32 = arith.constant 0 : i32
    %c0_i32_0 = arith.constant 0 : i32
    %c0_i32_1 = arith.constant 0 : i32
    return %c0_i32, %arg1, %c0_i32_0 : i32, i32, i32
  }
  func.func @transform_5(%arg0: i32, %arg1: i32) -> (i32, i32) {
    %c0_i32 = arith.constant 0 : i32
    %c0_i32_0 = arith.constant 0 : i32
    %c0_i32_1 = arith.constant 0 : i32
    return %c0_i32, %c0_i32_0 : i32, i32
  }
  func.func @transform_6(%arg0: i32, %arg1: i32) -> (i32, i32) {
    %c0_i32 = arith.constant 0 : i32
    %c0_i32_0 = arith.constant 0 : i32
    %c0_i32_1 = arith.constant 0 : i32
    return %c0_i32, %c0_i32_0 : i32, i32
  }
  func.func @transform_7(%arg0: i32, %arg1: i32) -> (i32, i32) {
    %c0_i32 = arith.constant 0 : i32
    %c0_i32_0 = arith.constant 0 : i32
    %c0_i32_1 = arith.constant 0 : i32
    return %c0_i32, %c0_i32_0 : i32, i32
  }
  func.func @transform_8(%arg0: i32, %arg1: i32) -> (i32, i32, i32) {
    %c0_i32 = arith.constant 0 : i32
    %c0_i32_0 = arith.constant 0 : i32
    %c0_i32_1 = arith.constant 0 : i32
    return %arg0, %c0_i32, %c0_i32_0 : i32, i32, i32
  }
}

</mosaic_0001>

<bundles_post_ra>
// kernel: tpu_custom_call.1
= control target key start
LH: loop header
LB: loop body
LE: loop exit
PB: predicated region body
PF: predicated region fallthrough
CT: control target
= control target key end

     0   :  { %s2058_s0 = inlined_call_operand.hbm [shape: f32[16], index: 0, kind: input, shape index: {}]   ;;  %s2059_s1 = inlined_call_operand.hbm [shape: f32[2,5,16,128], index: 1, kind: input, shape index: {}]   ;;  %s2060_s2 = inlined_call_operand.hbm [shape: bf16[2,16,128], index: 2, kind: input, shape index: {}]   ;;  %s2061_s3 = inlined_call_operand.hbm [shape: bf16[2,16,128], index: 3, kind: input, shape index: {}]   ;;  %s2062_s4 = inlined_call_operand.hbm [shape: f32[4,16,128], index: 4, kind: input, shape index: {}]   ;;  %s2063_s5 = inlined_call_operand.vmem [shape: f32[8,128], index: 5, kind: input, shape index: {}]   ;;  %s2064_s6 = inlined_call_operand.hbm [shape: f32[8,128], index: 6, kind: input, shape index: {}]   ;;  %s2065_s7 = inlined_call_operand.hbm [shape: f32[8,128], index: 7, kind: input, shape index: {}]   ;;  %s2066_s8 = inlined_call_operand.hbm [shape: f32[2,8,128], index: 8, kind: output, shape index: {}]  }
   0x1   :  { %2081 = sst [smem:[#allocation27_spill]] %s2058_s0 }
   0x2   :  { %2082 = sst [smem:[#allocation28_spill]] %s2060_s2 }
   0x3   :  { %2083 = sst [smem:[#allocation29_spill]] %s2062_s4 }
   0x4   :  { %2084 = sst [smem:[#allocation30_spill]] %s2066_s8 }
   0x5   :  { %13 = vsyncpa [#allocation5], 0 }
   0x6   :  { %14 = vsyncpa [#allocation3], 0 }
   0x7   :  { %16 = vsyncpa [#allocation3 + $0x1], 0 }
   0x8   :  { %17 = vsyncpa [#allocation8], 0 }
   0x9   :  { %19 = vsyncpa [#allocation8 + $0x1], 0 }
   0xa   :  { %20 = vsyncpa [#allocation11], 0 }
   0xb   :  { %21 = vsyncpa [#allocation14], 0 }
   0xc   :  { %22 = vsyncpa [#allocation4], 0 }
   0xd   :  { %24 = vsyncpa [#allocation4 + $0x1], 0  ;;  %s1670_s27 = smov 0   ;;  %s1672_s28 = smov 0  }
   0xe   :  { %s1674_s29 = smov 0   ;;  %s1676_s30 = smov 0  }
   0xf   :  { %s1678_s9 = smov 0   ;;  %s1680_s10 = smov 0  }
  0x10 LB: > { %2085 = sst [smem:[#allocation22_spill]] %s1584_s27  ;;  %s1701_s11 = sadd.s32 4294967295, %s1604_s10   ;;  %s1604_s10 = sphi %s1680_s10, %s30_s10   ;;  %s1600_s9 = sphi %s1678_s9, %s2125_s9   ;;  %s1596_s30 = sphi %s1676_s30, %s2124_s30   ;;  %s1592_s29 = sphi %s1674_s29, %s2120_s29   ;;  %s1588_s28 = sphi %s1672_s28, %s2123_s28   ;;  %s1584_s27 = sphi %s1670_s27, %s2122_s27  }
  0x11   : > { %2086 = sst [smem:[#allocation23_spill]] %s1592_s29  ;;  %s1084_s12 = sadd.s32 4294967294, %s1604_s10  }
  0x12   : > { %p85_p0 = scmp.ne.s32.totalorder %s1588_s28, %s1584_s27  ;;  %p2067_p1 = scmp.eq.s32.totalorder %s1701_s11, 0 }
  0x13   : > { %p260_p3 = scmp.eq.s32.totalorder %s1084_s12, 1  ;;  %p1085_p5 = scmp.ge.s32.totalorder %s1604_s10, 1 }
  0x14   : > { %p1710_p4 = por %p2067_p1, %p85_p0  ;;  %p267_p7 = scmp.lt.s32.totalorder %s1604_s10, 3 }
  0x15   : > { %p1715_p6 = por %p260_p3, %p85_p0  ;;  %s1606_s16 = smov [#allocation10]  }
  0x16   : > { %p1720_p8 = pnand %p1085_p5, %p267_p7  ;;  %s291_s17 = sshll.u32 %s1606_s16, 4  ;;  %s292_s17 = int_to_ptr.vmem [resolvable:$true] %s291_s17 }
  0x17   : > { %s2088_s14 = scalar_select %p1715_p6, 1, 0 }
  0x18   : > { %p1179_p9 = pneg %p1720_p8  ;;  %s42_s19 = sadd.s32 1, %s1600_s9 }
  0x19   : > { %2089 = sst [smem:[#allocation24_spill]] %s2088_s14  ;;  %s1346_s20 = scalar_lea.vmem %s292_s17, 1024 }
  0x1a   : > { %p1729_p11 = pnand %p1179_p9, %p2067_p1  ;;  %p1347_p13 = scmp.ne.s32.totalorder %s292_s17, %s1346_s20 }
  0x1b   : > { %p1354_p5 = scmp.lt.s32.totalorder %s292_s17, %s292_s17  ;;  %p1355_p7 = scmp.lt.s32.totalorder %s1346_s20, %s1346_s20 }
  0x1c   : > { %p2075_p12 = pneg %p1729_p11 }
  0x1d   : > { %p1356_p2 = por %p1355_p7, %p1354_p5 }
  0x1e   : > { %p1349_p0 = pnand %p1347_p13, %p2075_p12 }
  0x20   : > { %p1350_p3 = pneg %p1349_p0 }
  0x22   : > { %p1357_p10 = pnand %p1356_p2, %p1350_p3 }
  0x24   : > { %1360 = shalt.err (!%p1357_p10)
}
  0x25   : > { %s2068_s21 = smov 128   ;;  %s2069_s22 = smov 8  }
  0x26   : > { %s2092_s4 = sld [smem:[#allocation29_spill]]  ;;  %p44_p2 = scmp.ge.s32.totalorder %s42_s19, 2 }
  0x27   : > { %s72_s25 = sadd.s32 1, %s1592_s29  ;;  %p79_p9 = scmp.ne.s32.totalorder %s1592_s29, %s1588_s28 }
  0x28   : > { %p80_p10 = scmp.eq.s32.totalorder %s1604_s10, 0  ;;  %s2127_s19 = smov (%p44_p2, %s42_s19), 0 }
  0x29   : > { %2093 = sst [smem:[#allocation25_spill]] %s2127_s19  ;;  %p2094_p0 = scmp.eq.s32.totalorder %s1701_s11, 1 }
  0x2a   : > { %p81_p13 = por %p80_p10, %p79_p9  ;;  %s67_s12 = ssub.s32 %s1600_s9, %s2127_s19 }
  0x2b   : > { %p1755_p3 = por %p2094_p0, %p79_p9  ;;  %p1210_p5 = scmp.lt.s32.totalorder %s1604_s10, 2 }
  0x2c   : > { %1185 = dma.hbm_to_vmem [thread:$0]  (!%p1729_p11), %s2092_s4, 1024, %s292_s17, [#allocation11], %s2068_s21, %s2068_s21, %s2069_s22  }
  0x2d   : > { %p70_p7 = scmp.eq.s32.totalorder %s67_s12, 0  ;;  %s1763_s16 = sand.u32 1, %s1592_s29  }
  0x2e   : > { %p1765_p1 = pnand %p1210_p5, %p81_p13  ;;  %s353_s20 = sand.u32 1, %s1604_s10  }
  0x2f   : > { %s1771_s23 = scalar_select %p70_p7, %s1592_s29, %s72_s25  }
  0x30   : > { %s2077_s24 = sshll.u32 %s1763_s16, 3  ;;  %s2076_s21 = sshll.u32 %s1600_s9, 7 }
  0x31   : > { %2097 = sst [smem:[#allocation26_spill]] %s1771_s23  ;;  %s357_s19 = scalar_lea.vmem [#allocation7], %s2077_s24 }
  0x32   : > { %s2098_s2 = sld [smem:[#allocation28_spill]]  ;;  %s366_s14 = sshll.u32 %s357_s19, 4  ;;  %s367_s14 = int_to_ptr.vmem [resolvable:$true] %s366_s14 }
  0x33   : > { %s1782_s27 = scalar_lea.sflag [#allocation8], %s353_s20  ;;  %p2078_p2 = pneg %p1765_p1 }
  0x34   : > { %s1374_s8 = scalar_lea.vmem %s367_s14, 128  ;;  %s1609_s25 = smov [#allocation7]  }
  0x35   : > { %p1375_p9 = scmp.ne.s32.totalorder %s367_s14, %s1374_s8  ;;  %s1379_s23 = sshll.u32 %s1609_s25, 4  ;;  %s1380_s23 = int_to_ptr.vmem [resolvable:$false] %s1379_s23 }
  0x36   : > { %s1381_s29 = scalar_lea.vmem %s1380_s23, 256  ;;  %p1382_p0 = scmp.lt.s32.totalorder %s367_s14, %s1380_s23 }
  0x37   : > { %p1377_p10 = pnand %p1375_p9, %p2078_p2  ;;  %p1383_p5 = scmp.lt.s32.totalorder %s1381_s29, %s1374_s8 }
  0x38   : > { %s365_s12 = scalar_lea.hbm %s2098_s2, %s2076_s21 }
  0x39   : > { %p1378_p13 = pneg %p1377_p10  ;;  %p1384_p7 = por %p1383_p5, %p1382_p0 }
  0x3b   : > { %p1385_p12 = pnand %p1384_p7, %p1378_p13 }
  0x3d   : > { %1388 = shalt.err (!%p1385_p12)
}
  0x3e   : > { %s2079_s4 = smov 64   ;;  %s2080_s19 = smov 4  }
  0x3f   : > { %1198 = dma.hbm_to_vmem [thread:$0]  (!%p1765_p1), %s365_s12, 128, %s367_s14, %s1782_s27, %s2079_s4, %s2079_s4, %s2080_s19  }
  0x40   : > { %s1612_s22 = smov [#allocation2]   ;;  %s2099_s0 = sld [smem:[#allocation27_spill]] }
  0x41   : > { %s1613_s8 = smov [#allocation12]   ;;  %s1614_s23 = smov [#allocation13]  }
  0x42   : > { %s308_s29 = sshll.u32 %s1613_s8, 4  ;;  %s319_s21 = sshll.u32 %s1614_s23, 4  ;;  %s309_s29 = int_to_ptr.vmem [resolvable:$true] %s308_s29  ;;  %s320_s21 = int_to_ptr.vmem [resolvable:$true] %s319_s21 }
  0x43   : > { %s1411_s24 = scalar_lea.vmem %s309_s29, 128  ;;  %p2100_p9 = pneg %p1729_p11 }
  0x44   : > { %p1412_p12 = scmp.ne.s32.totalorder %s309_s29, %s1411_s24  ;;  %p1419_p0 = scmp.lt.s32.totalorder %s309_s29, %s309_s29 }
  0x45   : > { %p1420_p5 = scmp.lt.s32.totalorder %s1411_s24, %s1411_s24 }
  0x46   : > { %1182 = dma.hbm_to_smem (!%p1729_p11), %s2099_s0, 16, %s1612_s22, [#allocation5]  }
  0x47   : > { %p1414_p10 = pnand %p1412_p12, %p2100_p9  ;;  %p1421_p7 = por %p1420_p5, %p1419_p0 }
  0x49   : > { %p1415_p13 = pneg %p1414_p10 }
  0x4b   : > { %p1422_p2 = pnand %p1421_p7, %p1415_p13 }
  0x4d   : > { %1425 = shalt.err (!%p1422_p2)
}
  0x4e   : > { %1188 = dma.hbm_to_vmem [thread:$0]  (!%p1729_p11), %s2064_s6, 128, %s309_s29, [#allocation11]  }
  0x4f   : > { %s2101_s22 = sshll.u32 %s1763_s16, 3  ;;  %s1437_s8 = scalar_lea.vmem %s320_s21, 128 }
  0x50   : > { %s380_s20 = scalar_lea.vmem [#allocation9], %s2101_s22  ;;  %p1438_p12 = scmp.ne.s32.totalorder %s320_s21, %s1437_s8 }
  0x51   : > { %s389_s25 = sshll.u32 %s380_s20, 4  ;;  %p1445_p13 = scmp.lt.s32.totalorder %s320_s21, %s320_s21  ;;  %s1826_s25 = int_to_ptr.vmem [resolvable:$true] %s389_s25 }
  0x52   : > { %p1440_p10 = pnand %p1438_p12, %p2100_p9  ;;  %p1446_p2 = scmp.lt.s32.totalorder %s1437_s8, %s1437_s8 }
  0x54   : > { %p1441_p0 = pneg %p1440_p10  ;;  %p1447_p5 = por %p1446_p2, %p1445_p13 }
  0x56   : > { %p1448_p7 = pnand %p1447_p5, %p1441_p0 }
  0x58   : > { %1451 = shalt.err (!%p1448_p7)
}
  0x59   : > { %1191 = dma.hbm_to_vmem [thread:$0]  (!%p1729_p11), %s2065_s7, 128, %s320_s21, [#allocation14]  }
  0x5a   : > { %s2102_s29 = sshll.u32 %s1600_s9, 7  ;;  %s1142_s20 = smul.u32 80, %s1763_s16 }
  0x5b   : > { %s1823_s22 = scalar_lea.hbm %s2061_s3, %s2102_s29  ;;  %s1143_s8 = smul.u32 1280, %s1600_s9 }
  0x5c   : > { %s334_s23 = scalar_lea.vmem [#allocation6], %s1142_s20  ;;  %s331_s0 = scalar_lea.sflag [#allocation3], %s1763_s16 }
  0x5d   : > { %s342_s24 = scalar_lea.hbm %s2059_s1, %s1143_s8  ;;  %s343_s19 = sshll.u32 %s334_s23, 4  ;;  %s344_s19 = int_to_ptr.vmem [resolvable:$true] %s343_s19 }
  0x5e   : > { %s1465_s2 = scalar_lea.vmem %s344_s19, 1280  ;;  %p2103_p12 = pneg %p1765_p1 }
  0x5f   : > { %p1466_p11 = scmp.ne.s32.totalorder %s344_s19, %s1465_s2  ;;  %s1615_s21 = smov [#allocation6]  }
  0x60   : > { %s1470_s29 = sshll.u32 %s1615_s21, 4  ;;  %s1471_s29 = int_to_ptr.vmem [resolvable:$false] %s1470_s29 }
  0x61   : > { %p1468_p9 = pnand %p1466_p11, %p2103_p12  ;;  %s1472_s14 = scalar_lea.vmem %s1471_s29, 2560 }
  0x62   : > { %p1473_p0 = scmp.lt.s32.totalorder %s344_s19, %s1471_s29  ;;  %p1474_p13 = scmp.lt.s32.totalorder %s1472_s14, %s1465_s2 }
  0x63   : > { %p1469_p10 = pneg %p1468_p9 }
  0x64   : > { %p1475_p2 = por %p1474_p13, %p1473_p0 }
  0x66   : > { %p1476_p5 = pnand %p1475_p2, %p1469_p10 }
  0x68   : > { %1479 = shalt.err (!%p1476_p5)
}
  0x69   : > { %s2104_s4 = smov 8   ;;  %s2105_s12 = smov 128  }
  0x6a   : > { %1195 = dma.hbm_to_vmem [thread:$0]  (!%p1765_p1), %s342_s24, 1280, %s344_s19, %s331_s0, %s2105_s12, %s2105_s12, %s2104_s4  }
  0x6b   : > { %s1493_s16 = scalar_lea.vmem %s1826_s25, 128  ;;  %p2106_p11 = pmov %p2103_p12 }
  0x6c   : > { %p1494_p7 = scmp.ne.s32.totalorder %s1826_s25, %s1493_s16  ;;  %s1616_s2 = smov [#allocation9]  }
  0x6d   : > { %s1498_s20 = sshll.u32 %s1616_s2, 4  ;;  %s1499_s20 = int_to_ptr.vmem [resolvable:$false] %s1498_s20 }
  0x6e   : > { %p1496_p12 = pnand %p1494_p7, %p2106_p11  ;;  %s1500_s8 = scalar_lea.vmem %s1499_s20, 256 }
  0x6f   : > { %p1501_p10 = scmp.lt.s32.totalorder %s1826_s25, %s1499_s20  ;;  %p1502_p0 = scmp.lt.s32.totalorder %s1500_s8, %s1493_s16 }
  0x70   : > { %p1497_p9 = pneg %p1496_p12 }
  0x71   : > { %p1503_p13 = por %p1502_p0, %p1501_p10 }
  0x73   : > { %p1504_p2 = pnand %p1503_p13, %p1497_p9 }
  0x75   : > { %1507 = shalt.err (!%p1504_p2)
}
  0x76   : > { %s2107_s18 = smov 4   ;;  %s2108_s23 = smov 64  }
  0x77   : > { %1201 = dma.hbm_to_vmem [thread:$0]  (!%p1765_p1), %s1823_s22, 128, %s1826_s25, %s1782_s27, %s2108_s23, %s2108_s23, %s2107_s18  }
  0x78   : > { %401 = sbr.rel (%p1720_p8) target bundleno = 1219 (0x4c3), region = 52  ;;  %p2109_p5 = scmp.eq.s32.totalorder (!%p1720_p8), %s1701_s11, 0 }
  0x7d   : > { %1559 = dma.done.wait (%p2109_p5), [#allocation5], 16   ;;  %p2110_p7 = pmov %p2109_p5 }
  0x7e   : > { %s1862_s0 = sand.u32 1, %s1588_s28  }
  0x7f   : > { %1561 = vsyncadd (%p2110_p7), [#allocation5], 4294967280  ;;  %s1144_s17 = smul.u32 80, %s1862_s0  ;;  %s408_s19 = scalar_lea.sflag [#allocation3], %s1862_s0 }
  0x81   : > { %s1866_s24 = scalar_lea.vmem [#allocation6], %s1144_s17 }
  0x82   : > { %1563 = dma.done.wait (%p1710_p4), %s408_s19, 1280  }
  0x83   : > { %1565 = vsyncadd (%p1710_p4), %s408_s19, 4294966016  ;;  %s416_s27 = sand.u32 1, %s1701_s11   ;;  %s1874_s15 = sshll.u32 %s1862_s0, 3 }
  0x84   : > { %s417_s25 = scalar_lea.sflag [#allocation8], %s416_s27  ;;  %s420_s22 = scalar_lea.vmem [#allocation7], %s1874_s15 }
  0x85   : > { %1567 = dma.done.wait (%p1710_p4), %s417_s25, 256  }
  0x86   : > { %1569 = vsyncadd (%p1710_p4), %s417_s25, 4294967040  ;;  %s429_s21 = scalar_lea.vmem [#allocation9], %s1874_s15  ;;  %p2111_p1 = pmov %p2109_p5 }
  0x88   : > { %1571 = dma.done.wait (%p2111_p1), [#allocation11], 1152   ;;  %p2112_p8 = pmov %p2111_p1 }
  0x89   : > { %p2113_p11 = pmov %p2111_p1 }
  0x8a   : > { %1573 = vsyncadd (%p2112_p8), [#allocation11], 4294966144 }
  0x8b   : > { %1575 = dma.done.wait (%p2113_p11), [#allocation14], 128   ;;  %p2114_p12 = pmov %p2111_p1 }
  0x8d   : > { %1577 = vsyncadd (%p2114_p12), [#allocation14], 4294967168 }
  0x8e   : > { %446 = sfence }
  0x8f   : > { %v1134_v0 = vld [vmem:[%s420_s22] sm:$0xff]   ;;  %v514_v5 = vld [vmem:[%s1866_s24 + $0x8] sm:$0xff]  ;;  %v1108_v8 = vld [vmem:[%s1866_s24 + $0x10] sm:$0xff]  ;;  %s1116_s11 = sshll.u32 %s1596_s30, 3  ;;  %p751_p4 = scmp.eq.s32.totalorder %s1596_s30, 0 }
  0x90   : > { %v1890_v1 = vunpack.c.l.bf16 %v1134_v0  ;;  %v1892_v2 = vunpack.c.h.bf16 %v1134_v0  ;;  %v513_v4 = vld [vmem:[%s1866_s24] sm:$0xff]  ;;  %v1107_v7 = vmul.f32 -1.442695, %v514_v5  ;;  %v1109_v9 = vld [vmem:[%s1866_s24 + $0x18] sm:$0xff]  ;;  %v1110_v10 = vmul.f32 -1.442695, %v1108_v8 }
  0x91   : > { %v1106_v6 = vmul.f32 -1.442695, %v513_v4  ;;  %v1111_v11 = vmul.f32 -1.442695, %v1109_v9  ;;  %v1112_v12 = vld [vmem:[%s1866_s24 + $0x20] sm:$0xff]  ;;  %v1113_v13 = vld [vmem:[%s1866_s24 + $0x28] sm:$0xff] }
  0x92   : > { %v725_v3 = vadd.f32 %v1892_v2, %v1890_v1  ;;  %v1114_v14 = vld [vmem:[%s1866_s24 + $0x30] sm:$0xff]  ;;  %v549_v15 = vmul.f32 1.442695, %v1112_v12  ;;  %v1115_v16 = vld [vmem:[%s1866_s24 + $0x38] sm:$0xff]  ;;  %v551_v17 = vmul.f32 1.442695, %v1113_v13 }
  0x93   : > { %1280 = vpow2.f32 %v1106_v6  ;;  %v558_v18 = vmul.f32 1.442695, %v1114_v14  ;;  %v560_v19 = vmul.f32 1.442695, %v1115_v16  ;;  %s582_s13 = sadd.s32 2, %s1116_s11  ;;  %s1905_s29 = sld [smem:[#allocation2 + %s1116_s11]] }
  0x94   : > { %726 = vadd.xlane.f32.xlu1 %v725_v3  ;;  %1282 = vpow2.f32 %v1107_v7  ;;  %s580_s14 = sadd.s32 1, %s1116_s11  ;;  %s1907_s4 = sld [smem:[#allocation2 + %s582_s13]]  ;;  %v1912_v23 = vld [vmem:[%s1866_s24 + $0x40] sm:$0xff]  ;;  %v1919_v28 = vld [vmem:[%s1866_s24 + $0x48] sm:$0xff]  ;;  %vm843_vm8 = vcmask (%p751_p4), 7168  }
  0x95   : > { %1284 = vpow2.f32 %v1110_v10  ;;  %s584_s12 = sadd.s32 3, %s1116_s11  ;;  %s1909_s16 = sadd.s32 4, %s1116_s11  ;;  %v687_v30 = vand.u32 2147483647, %v1912_v23  ;;  %v688_v31 = vand.u32 2147483647, %v1919_v28 }
  0x96   : > { %1286 = vpow2.f32 %v1111_v11  ;;  %s1914_s2 = sld [smem:[#allocation2 + %s580_s14]]  ;;  %s628_s8 = sadd.s32 1, %s1909_s16  ;;  %v508_v33 = vld [vmem:[#allocation10 + $0x20] sm:$0xff]  ;;  %v509_v36 = vld [vmem:[#allocation10 + $0x28] sm:$0xff]  ;;  %v511_v38 = vld [vmem:[#allocation10 + $0x30] sm:$0xff] }
  0x97   : > { %1288 = vpow2.f32 %v549_v15  ;;  %s1916_s20 = sld [smem:[#allocation2 + %s584_s12]]  ;;  %s630_s23 = sadd.s32 2, %s1909_s16  ;;  %v689_v34 = vsub.f32 0.0, %v687_v30  ;;  %v690_v39 = vsub.f32 0.0, %v688_v31  ;;  %v512_v41 = vld [vmem:[#allocation10 + $0x38] sm:$0xff]  ;;  %v502_v46 = vld [vmem:[#allocation10] sm:$0xff] }
  0x98   : > { %1290 = vpow2.f32 %v551_v17  ;;  %s1924_s18 = sld [smem:[#allocation2 + %s1909_s16]]  ;;  %s632_s27 = sadd.s32 3, %s1909_s16  ;;  %v503_v51 = vld [vmem:[#allocation10 + $0x8] sm:$0xff]  ;;  %v505_v57 = vld [vmem:[#allocation10 + $0x10] sm:$0xff]  ;;  %v506_v62 = vld [vmem:[#allocation10 + $0x18] sm:$0xff] }
  0x99   : > { %1292 = vpow2.f32 %v558_v18  ;;  %s1930_s19 = sld [smem:[#allocation2 + %s628_s8]]  ;;  %v691_v44 = vmul.f32 1.442695, %v689_v34  ;;  %v592_v48 = vstv %s1905_s29  ;;  %v693_v50 = vmul.f32 1.442695, %v690_v39  ;;  %s1978_s16 = scalar_lea.vmem [#allocation15], %s1874_s15 }
  0x9a   : > { %1294 = vpow2.f32 %v560_v19  ;;  %s586_s17 = ssub.f32 %s1907_s4, %s1905_s29  ;;  %v589_v53 = vstv %s1907_s4  ;;  %s1617_s15 = smov (%p751_p4), 126  }
  0x9b   : > { %s1933_s24 = sld [smem:[#allocation2 + %s630_s23]]  ;;  %s1618_s8 = smov (%p751_p4), 127  }
  0x9c   : > { %s1937_s22 = sld [smem:[#allocation2 + %s632_s27]]  ;;  %v602_v49 = vstv %s1914_s2  ;;  %s1621_s23 = smov (%p751_p4), 4  }
  0x9d   : > { %s587_s25 = ssub.f32 %s1916_s20, %s1914_s2  ;;  %v599_v54 = vstv %s1916_s20 }
  0x9e   : > { %v640_v55 = vstv %s1924_s18 }
  0x9f   : > { %s1939_s11 = smul.f32 %s587_s25, %s586_s17  ;;  %v650_v60 = vstv %s1930_s19  ;;  %s1623_s17 = smov (%p751_p4), 124  }
  0xa0   : > { %v1281_v20 = vpop.eup %1280 }
  0xa1   : > { %v1283_v21 = vpop.eup %1282  ;;  %v521_v22 = vadd.f32 1.0, %v1281_v20  ;;  %v611_v3 = vstv %s1939_s11  ;;  %v637_v4 = vstv %s1933_s24  ;;  %s634_s13 = ssub.f32 %s1933_s24, %s1924_s18  ;;  %s1619_s18 = smov (%p751_p4), 2  }
  0xa2   : > { %v1285_v24 = vpop.eup %1284  ;;  %v522_v25 = vadd.f32 1.0, %v1283_v21  ;;  %v647_v8 = vstv %s1937_s22  ;;  %s635_s29 = ssub.f32 %s1937_s22, %s1930_s19 }
  0xa3   : > { %v1287_v26 = vpop.eup %1286  ;;  %1296 = vrcp.f32 %v521_v22  ;;  %v538_v27 = vadd.f32 1.0, %v1285_v24 }
  0xa4   : > { %1298 = vrcp.f32 %v522_v25  ;;  %v539_v29 = vadd.f32 1.0, %v1287_v26  ;;  %v1289_v32 = vpop.eup %1288  ;;  %s1957_s14 = smul.f32 %s635_s29, %s634_s13 }
  0xa5   : > { %1300 = vrcp.f32 %v538_v27  ;;  %v1291_v35 = vpop.eup %1290  ;;  %v553_v42 = vmul.f32 %v1289_v32, %v508_v33 }
  0xa6   : > { %1302 = vrcp.f32 %v539_v29  ;;  %v1293_v37 = vpop.eup %1292  ;;  %v554_v43 = vmul.f32 %v1291_v35, %v509_v36 }
  0xa7   : > { %v1295_v40 = vpop.eup %1294  ;;  %v562_v45 = vmul.f32 %v1293_v37, %v511_v38  ;;  %v564_v52 = vmul.f32 0.5, %v553_v42  ;;  %1304 = vpow2.f32 %v691_v44 }
  0xa8   : > { %v563_v47 = vmul.f32 %v1295_v40, %v512_v41  ;;  %v565_v58 = vmul.f32 0.5, %v554_v43  ;;  %1306 = vpow2.f32 %v693_v50 }
  0xa9   : > { %v1946_v59 = vmul.f32 %v562_v45, %v553_v42  ;;  %v570_v0 = vmul.f32 0.5, %v562_v45 }
  0xaa   : > { %v571_v7 = vmul.f32 0.5, %v563_v47  ;;  %v577_v13 = vmul.f32 %v563_v47, %v554_v43 }
  0xab   : > { %v612_v17 = vadd.f32 %v611_v3, %v1946_v59 }
  0xac   : > { %v613_v50 = vadd.f32 %v611_v3, %v577_v13 }
  0xb0   : > { %v1297_v56 = vpop.eup %1296 }
  0xb1   : > { %v1299_v61 = vpop.eup %1298  ;;  %v527_v63 = vadd.f32 %v1297_v56, %v502_v46 }
  0xb2   : > { %v1301_v5 = vpop.eup %1300  ;;  %v528_v6 = vadd.f32 %v1299_v61, %v503_v51 }
  0xb3   : > { %v1303_v9 = vpop.eup %1302  ;;  %v544_v10 = vadd.f32 %v1301_v5, %v505_v57  ;;  %v566_v11 = vsub.f32 %v527_v63, %v564_v52  ;;  %v568_v12 = vadd.f32 %v564_v52, %v527_v63 }
  0xb4   : > { %v545_v14 = vadd.f32 %v1303_v9, %v506_v62  ;;  %v567_v15 = vsub.f32 %v528_v6, %v565_v58  ;;  %v569_v16 = vadd.f32 %v565_v58, %v528_v6  ;;  %v1305_v52 = vpop.eup %1304 }
  0xb5   : > { %v572_v18 = vsub.f32 %v544_v10, %v570_v0  ;;  %v574_v19 = vadd.f32 %v570_v0, %v544_v10  ;;  %v590_v20 = vmin.f32 %v589_v53, %v568_v12  ;;  %v593_v21 = vmax.f32 %v592_v48, %v566_v11 }
  0xb6   : > { %v573_v22 = vsub.f32 %v545_v14, %v571_v7  ;;  %v575_v24 = vadd.f32 %v571_v7, %v545_v14  ;;  %v591_v25 = vmin.f32 %v589_v53, %v569_v16  ;;  %v594_v26 = vmax.f32 %v592_v48, %v567_v15 }
  0xb7   : > { %v595_v27 = vsub.f32 %v590_v20, %v593_v21  ;;  %v600_v29 = vmin.f32 %v599_v54, %v574_v19  ;;  %v603_v30 = vmax.f32 %v602_v49, %v572_v18  ;;  %v638_v31 = vmin.f32 %v637_v4, %v568_v12 }
  0xb8   : > { %v596_v32 = vsub.f32 %v591_v25, %v594_v26  ;;  %v601_v33 = vmin.f32 %v599_v54, %v575_v24  ;;  %v604_v34 = vmax.f32 %v602_v49, %v573_v22  ;;  %v639_v35 = vmin.f32 %v637_v4, %v569_v16  ;;  %v1138_v25 = vld [vmem:[%s429_s21] sm:$0xff]  }
  0xb9   : > { %v597_v36 = vmax.f32 %v595_v27, 0.0  ;;  %v605_v37 = vsub.f32 %v600_v29, %v603_v30  ;;  %v641_v38 = vmax.f32 %v640_v55, %v566_v11  ;;  %v642_v39 = vmax.f32 %v640_v55, %v567_v15  ;;  %v1307_v55 = vpop.eup %1306 }
  0xba   : > { %v598_v40 = vmax.f32 %v596_v32, 0.0  ;;  %v606_v41 = vsub.f32 %v601_v33, %v604_v34  ;;  %v648_v42 = vmin.f32 %v647_v8, %v574_v19  ;;  %v649_v43 = vmin.f32 %v647_v8, %v575_v24 }
  0xbb   : > { %v607_v44 = vmax.f32 %v605_v37, 0.0  ;;  %v643_v45 = vsub.f32 %v638_v31, %v641_v38  ;;  %v644_v46 = vsub.f32 %v639_v35, %v642_v39  ;;  %v651_v47 = vmax.f32 %v650_v60, %v572_v18 }
  0xbc   : > { %v608_v48 = vmax.f32 %v606_v41, 0.0  ;;  %v652_v51 = vmax.f32 %v650_v60, %v573_v22  ;;  %v659_v49 = vstv %s1957_s14  ;;  %v695_v3 = vadd.f32 1.0, %v1305_v52 }
  0xbd   : > { %v609_v53 = vmul.f32 %v607_v44, %v597_v36  ;;  %v645_v54 = vmax.f32 %v643_v45, 0.0  ;;  %v653_v56 = vsub.f32 %v648_v42, %v651_v47  ;;  %v646_v58 = vmax.f32 %v644_v46, 0.0 }
  0xbe   : > { %v610_v57 = vmul.f32 %v608_v48, %v598_v40  ;;  %v654_v61 = vsub.f32 %v649_v43, %v652_v51  ;;  %v660_v0 = vadd.f32 %v659_v49, %v1946_v59  ;;  %v661_v6 = vadd.f32 %v659_v49, %v577_v13 }
  0xbf   : > { %v614_v62 = vsub.f32 %v612_v17, %v609_v53  ;;  %v655_v63 = vmax.f32 %v653_v56, 0.0  ;;  %v696_v10 = vadd.f32 1.0, %v1307_v55  ;;  %v681_v17 = vmax.f32 %v1912_v23, 0.0 }
  0xc0   : > { %v615_v4 = vsub.f32 %v613_v50, %v610_v57  ;;  %v656_v5 = vmax.f32 %v654_v61, 0.0  ;;  %v683_v18 = vmul.f32 %v1890_v1, %v1912_v23  ;;  %v682_v21 = vmax.f32 %v1919_v28, 0.0 }
  0xc1   : > { %v616_v7 = vadd.f32 1e-09, %v614_v62  ;;  %v657_v8 = vmul.f32 %v655_v63, %v645_v54  ;;  %v684_v22 = vmul.f32 %v1892_v2, %v1919_v28  ;;  %v1139_v34 = vunpack.c.l.bf16 %v1138_v25 }
  0xc2   : > { %v617_v60 = vadd.f32 1e-09, %v615_v4  ;;  %v658_v9 = vmul.f32 %v656_v5, %v646_v58  ;;  %v685_v32 = vsub.f32 %v681_v17, %v683_v18  ;;  %v1140_v37 = vunpack.c.h.bf16 %v1138_v25  ;;  %v1989_v18 = vld [vmem:[#allocation13] sm:$0xff] (%p751_p4) }
  0xc3   : > { %1308 = vrcp.f32 %v616_v7  ;;  %v662_v11 = vsub.f32 %v660_v0, %v657_v8  ;;  %v686_v23 = vsub.f32 %v682_v21, %v684_v22  ;;  %v1992_v21 = vld [vmem:[#allocation12] sm:$0xff] (%p751_p4) }
  0xc4   : > { %1310 = vrcp.f32 %v617_v60  ;;  %v663_v12 = vsub.f32 %v661_v6, %v658_v9 }
  0xc5   : > { %v664_v14 = vadd.f32 1e-09, %v662_v11  ;;  %1312 = vlog2.f32 %v695_v3  ;;  %v735_v3 = vlaneseq }
  0xc6   : > { %v665_v15 = vadd.f32 1e-09, %v663_v12  ;;  %1314 = vlog2.f32 %v696_v10 }
  0xc7   : > { %1316 = vrcp.f32 %v664_v14  ;;  %v1972_v60 = vand.u32 127, %v735_v3 }
  0xc8   : > { %1318 = vrcp.f32 %v665_v15 }
  0xc9   : > { %vm738_vm2 = vcmp.eq.s32.totalorder %v1972_v60, 0  ;;  %vm741_vm3 = vcmp.eq.s32.totalorder %v1972_v60, 1  ;;  %vm745_vm4 = vcmp.eq.s32.totalorder %v1972_v60, 2  ;;  %vm854_vm5 = vcmp.ge.s32.totalorder (%p751_p4), %v1972_v60, 5 }
  0xca   : > { %vm855_vm6 = vcmp.lt.s32.totalorder (%p751_p4), %v1972_v60, 9  ;;  %vm887_vm9 = vcmp.eq.s32.totalorder (%p751_p4), %v1972_v60, 3  ;;  %vm890_vm10 = vcmp.eq.s32.totalorder (%p751_p4), %v1972_v60, 4 }
  0xcb   : > { %vm856_vm7 = vmand (%p751_p4), %vm854_vm5, %vm855_vm6 }
  0xd0   : > { %v1309_v59 = vpop.eup %1308 }
  0xd1   : > { %v1311_v16 = vpop.eup %1310  ;;  %v619_v13 = vmul.f32 %v1309_v59, %v609_v53 }
  0xd2   : > { %v1313_v19 = vpop.eup %1312  ;;  %v621_v20 = vmul.f32 %v1311_v16, %v610_v57 }
  0xd3   : > { %v1315_v24 = vpop.eup %1314  ;;  %v622_v26 = vmax.f32 %v619_v13, 0.0  ;;  %v698_v33 = vmul.f32 0.6931472, %v1313_v19  ;;  %v1986_v13 = vld [vmem:[%s2063_s5] sm:$0xff] (%p751_p4) }
  0xd4   : > { %v1317_v27 = vpop.eup %1316  ;;  %v623_v29 = vmax.f32 %v621_v20, 0.0  ;;  %v700_v36 = vmul.f32 0.6931472, %v1315_v24  ;;  %v766_v17 = vmul.f32 (%p751_p4), 1.442695, %v1986_v13  ;;  %v776_v24 = vmul.f32 (%p751_p4), 0.5, %v1992_v21 }
  0xd5   : > { %v1319_v30 = vpop.eup %1318  ;;  %v667_v31 = vmul.f32 %v1317_v27, %v657_v8  ;;  %v701_v28 = vadd.f32 %v698_v33, %v685_v32  ;;  %v1122_v25 = vmul.f32 (%p751_p4), -1.442695, %v1986_v13 }
  0xd6   : > { %v669_v35 = vmul.f32 %v1319_v30, %v658_v9  ;;  %v702_v41 = vadd.f32 %v700_v36, %v686_v23  ;;  %1321 = vpow2.f32 (%p751_p4), %v766_v17 }
  0xd7   : > { %v670_v38 = vmax.f32 %v622_v26, %v667_v31  ;;  %1323 = vpow2.f32 (%p751_p4), %v1122_v25 }
  0xd8   : > { %v671_v39 = vmax.f32 %v623_v29, %v669_v35 }
  0xd9   : > { %vm672_vm0 = vcmp.gt.f32.partialorder %v670_v38, 0.5 }
  0xda   : > { %vm673_vm1 = vcmp.gt.f32.partialorder %v671_v39, 0.5  ;;  %v674_v40 = vsel %vm672_vm0, 0.0, %v1139_v34 }
  0xdb   : > { %v675_v42 = vsel %vm673_vm1, 0.0, %v1140_v37  ;;  %v676_v43 = vmax.f32 %v674_v40, %v1890_v1 }
  0xdc   : > { %v677_v44 = vmax.f32 %v675_v42, %v1892_v2 }
  0xdd   : > { %v703_v45 = vmul.f32 %v701_v28, %v676_v43 }
  0xde   : > { %v704_v46 = vmul.f32 %v702_v41, %v677_v44  ;;  %v715_v48 = vadd.f32 %v677_v44, %v676_v43 }
  0xe0   : > { %v705_v47 = vadd.f32 %v704_v46, %v703_v45 }
  0xe2   : > { %706 = vadd.xlane.f32.xlu0 %v705_v47 }
  0xe3   : > { %v1322_v19 = vpop.eup (%p751_p4), %1321 }
  0xe4   : > { %v768_v20 = vmul.f32 (%p751_p4), %v1322_v19, %v1989_v18  ;;  %v1324_v26 = vpop.eup (%p751_p4), %1323 }
  0xe5   : > { %v762_v27 = vadd.f32 (%p751_p4), 1.0, %v1324_v26 }
  0xe6   : > { %716 = vadd.xlane.f32.xlu0 %v715_v48  ;;  %v769_v22 = vmul.f32 (%p751_p4), 0.5, %v768_v20 }
  0xe7   : > { %1325 = vrcp.f32 (%p751_p4), %v762_v27 }
  0xf4   : > { %v1326_v29 = vpop.eup (%p751_p4), %1325 }
  0xf5   : > { %v765_v31 = vadd.f32 (%p751_p4), %v1326_v29, %v1989_v18 }
  0xfc   : > { %771 = vrot.lane.b32.xlu0 (%p751_p4), %v769_v22, %s1617_s15 }
 0x100   : > { %778 = vrot.lane.b32.xlu0 (%p751_p4), %v776_v24, %s1617_s15 }
 0x104   : > { %798 = vrot.lane.b32.xlu0 (%p751_p4), %v1992_v21, %s1618_s8 }
 0x11d   : > { %v727_v50 = vpop.xlane.xlu1 %726 }
 0x11e   : > { %v728_v51 = vrot.slane %v727_v50, 4 }
 0x120   : > { %v729_v49 = vadd.f32 %v728_v51, %v727_v50 }
 0x122   : > { %v730_v56 = vrot.slane %v729_v49, 2 }
 0x124   : > { %v731_v2 = vadd.f32 %v730_v56, %v729_v49 }
 0x126   : > { %v732_v5 = vrot.slane %v731_v2, 1 }
 0x128   : > { %v733_v8 = vadd.f32 %v732_v5, %v731_v2 }
 0x16b   : > { %v707_v52 = vpop.xlane.xlu0 %706 }
 0x16c   : > { %v708_v53 = vrot.slane %v707_v52, 4 }
 0x16e   : > { %v709_v54 = vadd.f32 %v708_v53, %v707_v52  ;;  %v1620_v53 = vmov (%p751_p4), 4  }
 0x16f   : > { %v717_v57 = vpop.xlane.xlu0 %716  ;;  %1320 = vset.pattern.permute.xlu0 (%p751_p4), %v1620_v53 }
 0x170   : > { %v710_v58 = vrot.slane %v709_v54, 2  ;;  %v718_v61 = vrot.slane %v717_v57, 4 }
 0x172   : > { %v719_v1 = vadd.f32 %v718_v61, %v717_v57  ;;  %v711_v55 = vadd.f32 %v710_v58, %v709_v54 }
 0x173   : > { %v772_v30 = vpop.permute.xlu0 (%p751_p4), %771 }
 0x174   : > { %v720_v62 = vrot.slane %v719_v1, 2  ;;  %v712_v63 = vrot.slane %v711_v55, 1  ;;  %v774_v33 = vsub.f32 (%p751_p4), %v765_v31, %v772_v30  ;;  %v775_v34 = vadd.f32 (%p751_p4), %v772_v30, %v765_v31 }
 0x176   : > { %v721_v0 = vadd.f32 %v720_v62, %v719_v1  ;;  %v713_v4 = vadd.f32 %v712_v63, %v711_v55  ;;  %v868_v55 = vand.u32 (%p751_p4), 2147483647, %v1986_v13 }
 0x177   : > { %v779_v32 = vpop.permute.xlu0 (%p751_p4), %778 }
 0x178   : > { %1145 = vpush %v713_v4  ;;  %v722_v6 = vrot.slane %v721_v0, 1  ;;  %v781_v35 = vsub.f32 (%p751_p4), %v1992_v21, %v779_v32  ;;  %v782_v23 = vadd.f32 (%p751_p4), %v779_v32, %v1992_v21  ;;  %v869_v62 = vsub.f32 (%p751_p4), 0.0, %v868_v55 }
 0x17a   : > { %v723_v7 = vadd.f32 %v722_v6, %v721_v0  ;;  %v783_v36 = vmin.f32 (%p751_p4), %v775_v34, %v782_v23  ;;  %v784_v37 = vmax.f32 (%p751_p4), %v774_v33, %v781_v35  ;;  %v815_v38 = vmax.f32 (%p751_p4), %v775_v34, %v782_v23 }
 0x17b   : > { %v816_v39 = vmin.f32 (%p751_p4), %v774_v33, %v781_v35  ;;  %v799_v46 = vpop.permute.xlu0 (%p751_p4), %798  ;;  %v870_v5 = vmul.f32 (%p751_p4), 1.442695, %v869_v62 }
 0x17c   : > { %1147 = vpush %v723_v7  ;;  %v785_v40 = vsub.f32 (%p751_p4), %v783_v36, %v784_v37  ;;  %v801_v47 = vmul.f32 (%p751_p4), %v799_v46, %v1992_v21 }
 0x17d   : > { %1149 = vpush %v733_v8  ;;  %v817_v28 = vsub.f32 (%p751_p4), %v815_v38, %v816_v39 }
 0x17e   : > { %v786_v42 = vmax.f32 (%p751_p4), %v785_v40, 0.0 }
 0x17f   : > { %v818_v41 = vmax.f32 (%p751_p4), %v817_v28, 0.0 }
 0x180   : > { %788 = vrot.lane.b32.xlu1 (%p751_p4), %v786_v42, %s1618_s8 }
 0x181   : > { %820 = vrot.lane.b32.xlu0 (%p751_p4), %v818_v41, %s1618_s8 }
 0x184   : > { %793 = vrot.lane.b32.xlu1 (%p751_p4), %v768_v20, %s1618_s8 }
 0x1a9   : > { %s1146_s21 = spop %1145 }
 0x1aa   : > { %v739_v9 = vstv %s1146_s21 }
 0x1ab   : > { %v740_v11 = vsel %vm738_vm2, %v739_v9, 0.0  ;;  %v865_v9 = vmax.f32 (%p751_p4), %v1986_v13, 0.0 }
 0x1ad   : > { %s1148_s4 = spop %1147 }
 0x1ae   : > { %v742_v10 = vstv %s1148_s4  ;;  %s1150_s12 = spop %1149 }
 0x1af   : > { %v743_v12 = vsel %vm741_vm3, %v742_v10, 0.0  ;;  %v746_v14 = vstv %s1150_s12  ;;  %v866_v10 = vmul.f32 (%p751_p4), %v1992_v21, %v1986_v13 }
 0x1b0   : > { %v744_v15 = vadd.f32 %v743_v12, %v740_v11  ;;  %v747_v59 = vsel %vm745_vm4, %v746_v14, 0.0  ;;  %755 = sbr.rel (!%p751_p4) target bundleno = 1196 (0x4ac), region = 88  ;;  %v1622_v11 = vmov (%p751_p4), 0.0  }
 0x1b1   : > { %v1123_v12 = vsel (%p751_p4), %vm856_vm7, 1.0, %v1622_v11 }
 0x1b2   : > { %v748_v16 = vadd.f32 %v747_v59, %v744_v15  ;;  %v867_v15 = vsub.f32 (%p751_p4), %v865_v9, %v866_v10 }
 0x1b4   : > { %750 = vst [vmem:[%s1978_s16] sm:$0xff] %v748_v16 }
 0x1bb   : > { %v886_v40 = vld [vmem:[%s1978_s16] sm:$0xff] }
 0x1f2   : > { %v789_v43 = vpop.permute.xlu1 %788 }
 0x1f3   : > { %v791_v44 = vmul.f32 %v789_v43, %v786_v42  ;;  %v821_v54 = vpop.permute.xlu0 %820 }
 0x1f4   : > { %v823_v56 = vmul.f32 %v821_v54, %v818_v41 }
 0x1f5   : > { %804 = vrot.lane.b32.xlu1 %v791_v44, %s1619_s18 }
 0x1f6   : > { %v794_v45 = vpop.permute.xlu1 %793  ;;  %v829_v57 = vadd.f32 1e-09, %v823_v56 }
 0x1f7   : > { %v796_v48 = vmul.f32 %v794_v45, %v768_v20 }
 0x1f8   : > { %1327 = vrcp.f32 %v829_v57 }
 0x1f9   : > { %v802_v50 = vadd.f32 %v801_v47, %v796_v48 }
 0x205   : > { %v1328_v2 = vpop.eup %1327 }
 0x267   : > { %v805_v51 = vpop.permute.xlu1 %804 }
 0x268   : > { %v807_v49 = vsub.f32 %v802_v50, %v805_v51 }
 0x26a   : > { %v808_v52 = vadd.f32 1e-09, %v807_v49  ;;  %825 = vrot.lane.b32.xlu0 %v807_v49, %s1617_s15 }
 0x26c   : > { %810 = vrot.lane.b32.xlu1 %v808_v52, %s1617_s15 }
 0x26e   : > { %861 = vperm.xlu0 %1320, %v1989_v18  }
 0x2dc   : > { %v826_v61 = vpop.permute.xlu0 %825 }
 0x2dd   : > { %v828_v1 = vsub.f32 %v823_v56, %v826_v61 }
 0x2de   : > { %v811_v58 = vpop.permute.xlu1 %810 }
 0x2df   : > { %1329 = vrcp.f32 %v811_v58  ;;  %v831_v0 = vmul.f32 %v1328_v2, %v828_v1 }
 0x2e0   : > { %1331 = vpow2.f32 %v870_v5 }
 0x2e9   : > { %v862_v14 = vpop.permute.xlu0 %861 }
 0x2ea   : > { %v864_v16 = vmul.f32 %v1123_v12, %v862_v14 }
 0x2ec   : > { %v1330_v63 = vpop.eup %1329 }
 0x2ed   : > { %v814_v4 = vmul.f32 %v1330_v63, %v791_v44  ;;  %v1332_v8 = vpop.eup %1331 }
 0x2ee   : > { %v872_v3 = vadd.f32 1.0, %v1332_v8 }
 0x2ef   : > { %v832_v6 = vsub.f32 %v814_v4, %v831_v0 }
 0x2f0   : > { %1333 = vlog2.f32 %v872_v3 }
 0x2f1   : > { %v833_v7 = vsub.f32 1.0, %v832_v6 }
 0x2f3   : > { %835 = vrot.lane.b32.xlu1 %v833_v7, %s1621_s23 }
 0x2fd   : > { %v1334_v59 = vpop.eup %1333 }
 0x2fe   : > { %v874_v17 = vmul.f32 0.6931472, %v1334_v59 }
 0x300   : > { %v875_v19 = vadd.f32 %v874_v17, %v867_v15 }
 0x302   : > { %v876_v20 = vmul.f32 %v875_v19, %v864_v16 }
 0x304   : > { %877 = vadd.xlane.f32.xlu0 %v876_v20 }
 0x365   : > { %v836_v22 = vpop.permute.xlu1 %835 }
 0x366   : > { %v838_v24 = vmul.f32 %v836_v22, %v1989_v18 }
 0x368   : > { %840 = vrot.lane.b32.xlu1 %v838_v24, %s1623_s17 }
 0x38d   : > { %v878_v13 = vpop.xlane.xlu0 %877 }
 0x38e   : > { %v879_v21 = vrot.slane %v878_v13, 4 }
 0x390   : > { %v880_v27 = vadd.f32 %v879_v21, %v878_v13 }
 0x392   : > { %v881_v29 = vrot.slane %v880_v27, 2 }
 0x394   : > { %v882_v33 = vadd.f32 %v881_v29, %v880_v27 }
 0x396   : > { %v883_v23 = vrot.slane %v882_v33, 1 }
 0x398   : > { %v884_v37 = vadd.f32 %v883_v23, %v882_v33 }
 0x3da   : > { %v841_v25 = vpop.permute.xlu1 %840 }
 0x3db   : > { %v844_v26 = vsel %vm843_vm8, %v841_v25, 0.0 }
 0x3dc   : > { %845 = vadd.xlane.f32.xlu1 %v844_v26 }
 0x465   : > { %v846_v30 = vpop.xlane.xlu1 %845 }
 0x466   : > { %v847_v31 = vrot.slane %v846_v30, 4 }
 0x468   : > { %v848_v32 = vadd.f32 %v847_v31, %v846_v30 }
 0x46a   : > { %v849_v34 = vrot.slane %v848_v32, 2 }
 0x46c   : > { %v850_v35 = vadd.f32 %v849_v34, %v848_v32 }
 0x46e   : > { %v851_v36 = vrot.slane %v850_v35, 1 }
 0x470   : > { %v852_v18 = vadd.f32 %v851_v36, %v850_v35 }
 0x472   : > { %1151 = vpush %v852_v18 }
 0x473   : > { %1153 = vpush %v884_v37 }
 0x4a3   : > { %s1152_s19 = spop %1151 }
 0x4a4   : > { %v888_v38 = vstv %s1152_s19  ;;  %s1154_s27 = spop %1153 }
 0x4a5   : > { %v889_v39 = vsel %vm887_vm9, %v888_v38, 0.0  ;;  %v891_v28 = vstv %s1154_s27 }
 0x4a6   : > { %v892_v41 = vsel %vm890_vm10, %v891_v28, 0.0 }
 0x4a7   : > { %v893_v42 = vadd.f32 %v892_v41, %v889_v39 }
 0x4a9   : > { %v894_v43 = vadd.f32 %v893_v42, %v886_v40 }
 0x4ab   : > { %895 = vst [vmem:[%s1978_s16] sm:$0xff] %v894_v43 }
 0x4ac PF: > { %s1125_s24 = sshll.u32 %s1596_s30, 7  ;;  %s2115_s11 = sld [smem:[#allocation30_spill]] }
 0x4ad   : > { %s910_s29 = sshll.u32 %s1978_s16, 4  ;;  %s897_s14 = scalar_lea.sflag [#allocation4], %s1862_s0  ;;  %s911_s29 = int_to_ptr.vmem [resolvable:$true] %s910_s29 }
 0x4ae   : > { %s1508_s21 = scalar_lea.vmem %s911_s29, 128  ;;  %s1624_s4 = smov [#allocation15]  }
 0x4af   : > { %p1509_p9 = scmp.ne.s32.totalorder %s911_s29, %s1508_s21  ;;  %s1512_s12 = sshll.u32 %s1624_s4, 4  ;;  %s1513_s12 = int_to_ptr.vmem [resolvable:$false] %s1512_s12 }
 0x4b0   : > { %s1514_s2 = scalar_lea.vmem %s1513_s12, 256  ;;  %p1515_p13 = scmp.lt.s32.totalorder %s911_s29, %s1513_s12 }
 0x4b1   : > { %p1510_p10 = pnand %p1509_p9, %p1755_p3  ;;  %p1516_p2 = scmp.lt.s32.totalorder %s1514_s2, %s1508_s21 }
 0x4b2   : > { %s908_s13 = scalar_lea.hbm %s2115_s11, %s1125_s24 }
 0x4b3   : > { %p1511_p0 = pneg %p1510_p10  ;;  %p1517_p5 = por %p1516_p2, %p1515_p13 }
 0x4b5   : > { %p1518_p7 = pnand %p1517_p5, %p1511_p0 }
 0x4b7   : > { %1521 = shalt.err (!%p1518_p7)
}
 0x4b8   : > { %s1522_s30 = scalar_lea.hbm %s908_s13, 128  ;;  %s1526_s20 = scalar_lea.hbm %s2115_s11, 256 }
 0x4b9   : > { %p1523_p1 = scmp.ne.s32.totalorder %s908_s13, %s1522_s30  ;;  %p1527_p12 = scmp.lt.s32.totalorder %s908_s13, %s2115_s11 }
 0x4ba   : > { %p1528_p4 = scmp.lt.s32.totalorder %s1526_s20, %s1522_s30 }
 0x4bb   : > { %p1524_p8 = pnand %p1523_p1, %p1755_p3 }
 0x4bc   : > { %p1529_p9 = por %p1528_p4, %p1527_p12 }
 0x4bd   : > { %p1525_p11 = pneg %p1524_p8 }
 0x4bf   : > { %p1530_p10 = pnand %p1529_p9, %p1525_p11 }
 0x4c1   : > { %1533 = shalt.err (!%p1530_p10)
}
 0x4c2   : > { %1177 = dma.vmem_to_hbm [thread:$0]  (%p1755_p3), %s911_s29, 128, %s908_s13, %s897_s14  }
 0x4c3 PF: > { %s2116_s18 = sld [smem:[#allocation22_spill]]  ;;  %p2118_p0 = scmp.ge.s32.totalorder %s1604_s10, 2 }
 0x4c5   : > { %p1203_p13 = pnand %p2118_p0, %p1715_p6 }
 0x4c7   : > { %p1204_p2 = pneg %p1203_p13 }
 0x4c9   : > { %s922_s17 = sand.u32 1, %s2116_s18  }
 0x4ca   : > { %s923_s19 = scalar_lea.sflag [#allocation4], %s922_s17 }
 0x4cb   : > { %1579 = dma.done.wait (%p1204_p2), %s923_s19, 128  }
 0x4cc   : > { %1581 = vsyncadd (%p1204_p2), %s923_s19, 4294967168  ;;  %s30_s10 = sadd.s32 1, %s1604_s10   ;;  %s2119_s24 = sld [smem:[#allocation23_spill]] }
 0x4cd   : > { %p27_p5 = scmp.ge.s32.totalorder %s30_s10, 4   ;;  %s2120_s29 = sld [smem:[#allocation26_spill]] }
 0x4ce   : > { %s2121_s26 = sld [smem:[#allocation25_spill]]  ;;  %s2122_s27 = smov %s1588_s28 }
 0x4cf   : > { %s2124_s30 = smov %s1600_s9 }
 0x4d0   :  { %29 = sbr.rel (!%p27_p5) target bundleno = 16 (0x10), region = 154 }
 0x4d2   : > { %s2123_s28 = smov %s2119_s24 }
 0x4d4   : > { %s2125_s9 = smov %s2121_s26 }
 0x4d5   :  { %928 = vsyncpa [#allocation3], 1 }
 0x4d6   :  { %930 = vsyncpa [#allocation3 + $0x1], 1 }
 0x4d7   :  { %931 = vsyncpa [#allocation8], 1 }
 0x4d8   :  { %933 = vsyncpa [#allocation8 + $0x1], 1 }
 0x4d9   :  { %934 = vsyncpa [#allocation11], 1 }
 0x4da   :  { %935 = vsyncpa [#allocation14], 1 }
 0x4db   :  { %936 = vsyncpa [#allocation4], 1 }
 0x4dc   :  { %938 = vsyncpa [#allocation4 + $0x1], 1 }
 0x4dd   :  { %939 = vsyncpa [#allocation5], 1 }
 0x4de   :  { %941 = vsyncpa [#allocation5 + $0x1], 1 }

</bundles_post_ra>
